<compile_context>
chip_gen: v5e
topology: v5e:2x2
jax: 0.10.0
libtpu: 0.0.40
codegen_flags: <defaults>
</compile_context>

<pallas_src>
import functools
import math

import jax
import jax.numpy as jnp
from jax import lax
from jax.experimental import pallas as pl
from jax.experimental.pallas import tpu as pltpu


# ----------------------------------------------------------------------------
# Fused ViT forward kernel
# ----------------------------------------------------------------------------

def _vit_fused_kernel(
    tokens_ref, pos_ref, w_pe_ref, b_pe_ref,
    ln1_g_ref, ln1_b_ref, w_qkv_ref, b_qkv_ref, w_proj_ref, b_proj_ref,
    ln2_g_ref, ln2_b_ref, w1_ref, b1_ref, w2_ref, b2_ref,
    out_g_ref, out_b_ref, wc_ref, bc_ref,
    o_ref,
    *, depth, num_heads, block_b, n_tok, embed, eps,
):
    H = num_heads
    Dh = embed // H
    M = block_b * n_tok
    scale = 1.0 / math.sqrt(Dh)

    def mm(x, w):
        # Activation cast to bf16 only; weights are already stored in bf16.
        return jnp.dot(x.astype(jnp.bfloat16), w,
                       preferred_element_type=jnp.float32)

    def layer_norm(x, g, b):
        mean = jnp.mean(x, axis=-1, keepdims=True)
        xc = x - mean
        var = jnp.mean(xc * xc, axis=-1, keepdims=True)
        return xc * lax.rsqrt(var + eps) * g + b

    def gelu(x):
        # tanh-approx GELU: guaranteed Mosaic lowering + runs on the EUP slot.
        # TODO(synk): nn.GELU default is the exact erf form (max abs dev ~3e-4).
        return jax.nn.gelu(x, approximate=True)

    # ---- patch embedding + positional encoding (pos pre-tiled in wrapper) ---
    tokens = tokens_ref[0]                                       # (M, patch_dim)
    x = mm(tokens, w_pe_ref[...]) + b_pe_ref[...] + pos_ref[...]  # (M, E) f32
    # embedding_dropout(p=0.0) -> identity

    # ---- block-diagonal attention bias (hoisted outside the depth loop) -----
    if block_b > 1:
        row_img = lax.broadcasted_iota(jnp.int32, (M, M), 0) // n_tok
        col_img = lax.broadcasted_iota(jnp.int32, (M, M), 1) // n_tok
        attn_bias = jnp.where(row_img == col_img,
                              jnp.float32(0.0), jnp.float32(-1e30))
    else:
        attn_bias = None

    # ---- transformer encoder blocks ------------------------------------------
    # TODO(synk): TransformerEncoder source was not provided with the reference;
    # assuming the standard pre-norm block: x += Proj(Attn(LN1(x)));
    # x += W2(GELU(W1(LN2(x)))).
    for d in range(depth):
        h = layer_norm(x, ln1_g_ref[d], ln1_b_ref[d])            # (M, E)
        qkv = mm(h, w_qkv_ref[d]) + b_qkv_ref[d]                 # (M, 3E)
        q = qkv[:, 0 * embed:1 * embed]
        k = qkv[:, 1 * embed:2 * embed]
        v = qkv[:, 2 * embed:3 * embed]
        w_proj_d = w_proj_ref[d]                                 # (E, E) bf16

        attn_proj = jnp.zeros((M, embed), jnp.float32)
        for hh in range(H):
            c0 = hh * Dh
            qh = q[:, c0:c0 + Dh].astype(jnp.bfloat16)
            kh = k[:, c0:c0 + Dh].astype(jnp.bfloat16)
            vh = v[:, c0:c0 + Dh].astype(jnp.bfloat16)
            # q @ k^T without materializing an explicit transpose of k.
            s = lax.dot_general(qh, kh, (((1,), (1,)), ((), ())),
                                preferred_element_type=jnp.float32) * scale
            if attn_bias is not None:
                s = s + attn_bias            # mask BEFORE the row-max
            s = s - jnp.max(s, axis=-1, keepdims=True)
            p = jnp.exp(s)
            p = p * pl.reciprocal(jnp.sum(p, axis=-1, keepdims=True),
                                  approx=True)
            # attention_dropout(p=0.0) -> identity
            out_h = jnp.dot(p.astype(jnp.bfloat16), vh,
                            preferred_element_type=jnp.float32)  # (M, Dh)
            # Fold the head output straight into the projection matmul
            # (sum_h out_h @ W_proj[h*Dh:(h+1)*Dh, :]) -> no head concat.
            attn_proj = attn_proj + jnp.dot(
                out_h.astype(jnp.bfloat16), w_proj_d[c0:c0 + Dh, :],
                preferred_element_type=jnp.float32)

        x = x + attn_proj + b_proj_ref[d]
        # output_dropout(p=0.0) -> identity

        h = layer_norm(x, ln2_g_ref[d], ln2_b_ref[d])
        h = gelu(mm(h, w1_ref[d]) + b1_ref[d])
        x = x + mm(h, w2_ref[d]) + b2_ref[d]

    # ---- avg-pool head --------------------------------------------------------
    y = gelu(layer_norm(x, out_g_ref[...], out_b_ref[...]))       # (M, E)
    pooled = y.reshape(block_b, n_tok, embed).mean(axis=1)        # (block_b, E)
    # classification_dropout(p=0.3) -> identity in eval mode
    o_ref[0] = mm(pooled, wc_ref[...]) + bc_ref[...]              # (block_b, NCpad)


# ----------------------------------------------------------------------------
# Wrapper
# ----------------------------------------------------------------------------

def _pixel_unshuffle_tokens(x, patch_size):
    """nn.PixelUnshuffle(p) + view/transpose -> (B, N, C*p*p). x: NCHW."""
    B, C, Hh, Ww = x.shape
    p = patch_size
    Hp, Wp = Hh // p, Ww // p
    xu = x.reshape(B, C, Hp, p, Wp, p)
    xu = xu.transpose(0, 1, 3, 5, 2, 4)          # (B, C, i, j, Hp, Wp)
    xu = xu.reshape(B, C * p * p, Hp * Wp)       # == .view in PyTorch
    return xu.transpose(0, 2, 1)                 # (B, N, C*p*p)


def _pick_block_b(B, N, target_rows=256):
    """Target ~256 rows per grid step (MXU-native M on v6e/v7x) but keep at
    least 2 grid steps when the batch allows it (v7x has 2 TensorCores)."""
    cap = max(1, target_rows // N)
    divisors = [d for d in range(1, B + 1) if B % d == 0 and d <= cap]
    block_b = max(divisors)
    if B >= 2 and B // block_b < 2:
        smaller = [d for d in divisors if B // d >= 2]
        if smaller:
            block_b = max(smaller)
    return block_b


def vision_transformer_forward(x, params, *, patch_size, num_heads,
                               num_classes, block_b=None):
    tokens = _pixel_unshuffle_tokens(x, patch_size)      # (B, N, patch_dim)
    B, N, patch_dim = tokens.shape
    E = params["w_pe"].shape[1]
    depth = params["w_qkv"].shape[0]
    nc_pad = params["wc_pad"].shape[1]

    if block_b is None:
        block_b = _pick_block_b(B, N)
    assert B % block_b == 0
    num_blocks = B // block_b
    M = block_b * N

    # Pre-flatten tokens into per-grid-step blocks; pre-tile the positional
    # embedding to (M, E) so the kernel does a plain broadcast-free add.
    tokens3 = tokens.reshape(num_blocks, M, patch_dim)
    pos_tiled = jnp.tile(params["pos"], (block_b, 1))     # (M, E)

    def const_spec(arr):
        nd = arr.ndim
        return pl.BlockSpec(arr.shape, lambda i, _nd=nd: (0,) * _nd)

    tokens_spec = pl.BlockSpec((1, M, patch_dim), lambda i: (i, 0, 0))

    weight_names = ["w_pe", "b_pe",
                    "ln1_g", "ln1_b", "w_qkv", "b_qkv", "w_proj", "b_proj",
                    "ln2_g", "ln2_b", "w1", "b1", "w2", "b2",
                    "out_g", "out_b", "wc_pad", "bc_pad"]
    weight_args = [params[n] for n in weight_names]

    in_specs = [tokens_spec, const_spec(pos_tiled)]
    in_specs += [const_spec(w) for w in weight_args]

    kernel = functools.partial(
        _vit_fused_kernel, depth=depth, num_heads=num_heads,
        block_b=block_b, n_tok=N, embed=E, eps=1e-5)

    out = pl.pallas_call(
        kernel,
        grid=(num_blocks,),
        in_specs=in_specs,
        out_specs=pl.BlockSpec((1, block_b, nc_pad), lambda i: (i, 0, 0)),
        out_shape=jax.ShapeDtypeStruct((num_blocks, block_b, nc_pad),
                                       jnp.float32),
        compiler_params=pltpu.CompilerParams(
            dimension_semantics=("parallel",),
            vmem_limit_bytes=32 * 1024 * 1024),
    )(tokens3, pos_tiled, *weight_args)

    return out.reshape(B, nc_pad)[:, :num_classes]


# ----------------------------------------------------------------------------
# Deterministic parameter init (synthetic weights, shapes from __init__).
# Matmul weights are stored in bf16 (MXU-native); biases / LN params stay f32.
# ----------------------------------------------------------------------------

def init_params(key, *, in_shape, patch_size, embedding_dims, depth,
                num_heads, num_classes):
    C, Hh, Ww = in_shape
    E = embedding_dims
    N = (Hh // patch_size) * (Ww // patch_size)
    patch_dim = C * patch_size ** 2
    bf16 = jnp.bfloat16

    def dense(k, fan_in, fan_out):
        kw, kb = jax.random.split(k)
        lim = 1.0 / math.sqrt(fan_in)
        w = jax.random.uniform(kw, (fan_in, fan_out), jnp.float32, -lim, lim)
        b = jax.random.uniform(kb, (fan_out,), jnp.float32, -lim, lim)
        return w, b

    keys = jax.random.split(key, 3 + depth)
    params = {}
    w_pe, b_pe = dense(keys[0], patch_dim, E)
    params["w_pe"] = w_pe.astype(bf16)
    params["b_pe"] = b_pe.reshape(1, E)
    params["pos"] = 0.02 * jax.random.normal(keys[1], (N, E), jnp.float32)
    params["out_g"] = jnp.ones((1, E), jnp.float32)
    params["out_b"] = jnp.zeros((1, E), jnp.float32)

    wc, bc = dense(keys[2], E, num_classes)
    nc_pad = ((num_classes + 127) // 128) * 128   # lane-dense classifier store
    params["wc_pad"] = (jnp.zeros((E, nc_pad), jnp.float32)
                        .at[:, :num_classes].set(wc)).astype(bf16)
    params["bc_pad"] = jnp.zeros((1, nc_pad), jnp.float32).at[:, :num_classes].set(bc)

    ln1_g, ln1_b, ln2_g, ln2_b = [], [], [], []
    w_qkv, b_qkv, w_proj, b_proj = [], [], [], []
    w1l, b1l, w2l, b2l = [], [], [], []
    for d in range(depth):
        bk = jax.random.split(keys[3 + d], 6)
        wq, bq = dense(bk[0], E, E)
        wk, bkk = dense(bk[1], E, E)
        wv, bv = dense(bk[2], E, E)
        wp, bp = dense(bk[3], E, E)
        w1, b1 = dense(bk[4], E, 4 * E)
        w2, b2 = dense(bk[5], 4 * E, E)
        ln1_g.append(jnp.ones((1, E), jnp.float32))
        ln1_b.append(jnp.zeros((1, E), jnp.float32))
        ln2_g.append(jnp.ones((1, E), jnp.float32))
        ln2_b.append(jnp.zeros((1, E), jnp.float32))
        w_qkv.append(jnp.concatenate([wq, wk, wv], axis=1))          # (E, 3E)
        b_qkv.append(jnp.concatenate([bq, bkk, bv]).reshape(1, 3 * E))
        w_proj.append(wp)
        b_proj.append(bp.reshape(1, E))
        w1l.append(w1)
        b1l.append(b1.reshape(1, 4 * E))
        w2l.append(w2)
        b2l.append(b2.reshape(1, E))

    stack = lambda lst: jnp.stack(lst, axis=0)
    params.update(
        ln1_g=stack(ln1_g), ln1_b=stack(ln1_b),
        ln2_g=stack(ln2_g), ln2_b=stack(ln2_b),
        w_qkv=stack(w_qkv).astype(bf16), b_qkv=stack(b_qkv),
        w_proj=stack(w_proj).astype(bf16), b_proj=stack(b_proj),
        w1=stack(w1l).astype(bf16), b1=stack(b1l),
        w2=stack(w2l).astype(bf16), b2=stack(b2l))
    return params


# ----------------------------------------------------------------------------

if __name__ == "__main__":
    IN_SHAPE = (4, 16, 16)      # (C, H, W)
    PATCH_SIZE = 4
    EMBED = 32
    DEPTH = 2
    HEADS = 4
    NUM_CLASSES = 10
    BATCH = 2

    key = jax.random.PRNGKey(0)
    k_x, k_p = jax.random.split(key)
    x = jax.random.normal(k_x, (BATCH,) + IN_SHAPE, jnp.float32)   # NCHW

    params = init_params(k_p, in_shape=IN_SHAPE, patch_size=PATCH_SIZE,
                         embedding_dims=EMBED, depth=DEPTH, num_heads=HEADS,
                         num_classes=NUM_CLASSES)

    fwd = jax.jit(functools.partial(vision_transformer_forward,
                                    patch_size=PATCH_SIZE, num_heads=HEADS,
                                    num_classes=NUM_CLASSES))
    logits = fwd(x, params)
    jax.block_until_ready(logits)
    assert logits.shape == (BATCH, NUM_CLASSES)
    print("KERNEL_OK")
</pallas_src>

<mosaic_0001>
module attributes {stable_mosaic.version = 11 : i64} {
  func.func @_vit_fused_kernel(%arg0: i32, %arg1: memref<1x16x64xf32, #tpu.memory_space<vmem>>, %arg2: memref<16x32xf32, #tpu.memory_space<vmem>>, %arg3: memref<64x32xbf16, #tpu.memory_space<vmem>>, %arg4: memref<1x32xf32, #tpu.memory_space<vmem>>, %arg5: memref<2x1x32xf32, #tpu.memory_space<vmem>>, %arg6: memref<2x1x32xf32, #tpu.memory_space<vmem>>, %arg7: memref<2x32x96xbf16, #tpu.memory_space<vmem>>, %arg8: memref<2x1x96xf32, #tpu.memory_space<vmem>>, %arg9: memref<2x32x32xbf16, #tpu.memory_space<vmem>>, %arg10: memref<2x1x32xf32, #tpu.memory_space<vmem>>, %arg11: memref<2x1x32xf32, #tpu.memory_space<vmem>>, %arg12: memref<2x1x32xf32, #tpu.memory_space<vmem>>, %arg13: memref<2x32x128xbf16, #tpu.memory_space<vmem>>, %arg14: memref<2x1x128xf32, #tpu.memory_space<vmem>>, %arg15: memref<2x128x32xbf16, #tpu.memory_space<vmem>>, %arg16: memref<2x1x32xf32, #tpu.memory_space<vmem>>, %arg17: memref<1x32xf32, #tpu.memory_space<vmem>>, %arg18: memref<1x32xf32, #tpu.memory_space<vmem>>, %arg19: memref<32x128xbf16, #tpu.memory_space<vmem>>, %arg20: memref<1x128xf32, #tpu.memory_space<vmem>>, %arg21: memref<1x1x128xf32, #tpu.memory_space<vmem>>) attributes {dimension_semantics = [#tpu.dimension_semantics<parallel>], iteration_bounds = array<i64: 2>, scalar_prefetch = 0 : i64, scratch_operands = 0 : i64, tpu.core_type = #tpu.core_type<tc>, window_params = [{transform_indices = @transform_0, window_bounds = array<i64: 1, 16, 64>}, {pipeline_mode = #tpu.pipeline_mode<synchronous>, transform_indices = @transform_1, window_bounds = array<i64: 16, 32>}, {pipeline_mode = #tpu.pipeline_mode<synchronous>, transform_indices = @transform_2, window_bounds = array<i64: 64, 32>}, {pipeline_mode = #tpu.pipeline_mode<synchronous>, transform_indices = @transform_3, window_bounds = array<i64: 1, 32>}, {pipeline_mode = #tpu.pipeline_mode<synchronous>, transform_indices = @transform_4, window_bounds = array<i64: 2, 1, 32>}, {pipeline_mode = #tpu.pipeline_mode<synchronous>, transform_indices = @transform_5, window_bounds = array<i64: 2, 1, 32>}, {pipeline_mode = #tpu.pipeline_mode<synchronous>, transform_indices = @transform_6, window_bounds = array<i64: 2, 32, 96>}, {pipeline_mode = #tpu.pipeline_mode<synchronous>, transform_indices = @transform_7, window_bounds = array<i64: 2, 1, 96>}, {pipeline_mode = #tpu.pipeline_mode<synchronous>, transform_indices = @transform_8, window_bounds = array<i64: 2, 32, 32>}, {pipeline_mode = #tpu.pipeline_mode<synchronous>, transform_indices = @transform_9, window_bounds = array<i64: 2, 1, 32>}, {pipeline_mode = #tpu.pipeline_mode<synchronous>, transform_indices = @transform_10, window_bounds = array<i64: 2, 1, 32>}, {pipeline_mode = #tpu.pipeline_mode<synchronous>, transform_indices = @transform_11, window_bounds = array<i64: 2, 1, 32>}, {pipeline_mode = #tpu.pipeline_mode<synchronous>, transform_indices = @transform_12, window_bounds = array<i64: 2, 32, 128>}, {pipeline_mode = #tpu.pipeline_mode<synchronous>, transform_indices = @transform_13, window_bounds = array<i64: 2, 1, 128>}, {pipeline_mode = #tpu.pipeline_mode<synchronous>, transform_indices = @transform_14, window_bounds = array<i64: 2, 128, 32>}, {pipeline_mode = #tpu.pipeline_mode<synchronous>, transform_indices = @transform_15, window_bounds = array<i64: 2, 1, 32>}, {pipeline_mode = #tpu.pipeline_mode<synchronous>, transform_indices = @transform_16, window_bounds = array<i64: 1, 32>}, {pipeline_mode = #tpu.pipeline_mode<synchronous>, transform_indices = @transform_17, window_bounds = array<i64: 1, 32>}, {pipeline_mode = #tpu.pipeline_mode<synchronous>, transform_indices = @transform_18, window_bounds = array<i64: 32, 128>}, {pipeline_mode = #tpu.pipeline_mode<synchronous>, transform_indices = @transform_19, window_bounds = array<i64: 1, 128>}, {transform_indices = @transform_20, window_bounds = array<i64: 1, 1, 128>}]} {
    %c0 = arith.constant 0 : index
    %c0_0 = arith.constant 0 : index
    %c0_1 = arith.constant 0 : index
    %0 = vector.load %arg1[%c0, %c0_0, %c0_1] : memref<1x16x64xf32, #tpu.memory_space<vmem>>, vector<1x16x64xf32>
    %1 = vector.shape_cast %0 : vector<1x16x64xf32> to vector<16x64xf32>
    %c0_2 = arith.constant 0 : index
    %c0_3 = arith.constant 0 : index
    %2 = vector.load %arg3[%c0_2, %c0_3] : memref<64x32xbf16, #tpu.memory_space<vmem>>, vector<64x32xbf16>
    %3 = arith.truncf %1 : vector<16x64xf32> to vector<16x64xbf16>
    %cst = arith.constant dense<0.000000e+00> : vector<16x32xf32>
    %4 = tpu.matmul %3, %2, %cst {dimension_numbers = #tpu.dot_dimension_numbers<[1], [0], [0], [1], [0, 0, 1, 1], [], []>} : vector<16x64xbf16>, vector<64x32xbf16>, vector<16x32xf32> -> vector<16x32xf32>
    %c0_4 = arith.constant 0 : index
    %c0_5 = arith.constant 0 : index
    %5 = vector.load %arg4[%c0_4, %c0_5] : memref<1x32xf32, #tpu.memory_space<vmem>>, vector<1x32xf32>
    %6 = vector.broadcast %5 : vector<1x32xf32> to vector<16x32xf32>
    %7 = arith.addf %4, %6 : vector<16x32xf32>
    %c0_6 = arith.constant 0 : index
    %c0_7 = arith.constant 0 : index
    %8 = vector.load %arg2[%c0_6, %c0_7] : memref<16x32xf32, #tpu.memory_space<vmem>>, vector<16x32xf32>
    %9 = arith.addf %7, %8 : vector<16x32xf32>
    %c0_8 = arith.constant 0 : index
    %c0_9 = arith.constant 0 : index
    %c0_10 = arith.constant 0 : index
    %10 = vector.load %arg5[%c0_8, %c0_9, %c0_10] : memref<2x1x32xf32, #tpu.memory_space<vmem>>, vector<1x1x32xf32>
    %11 = vector.shape_cast %10 : vector<1x1x32xf32> to vector<1x32xf32>
    %c0_11 = arith.constant 0 : index
    %c0_12 = arith.constant 0 : index
    %c0_13 = arith.constant 0 : index
    %12 = vector.load %arg6[%c0_11, %c0_12, %c0_13] : memref<2x1x32xf32, #tpu.memory_space<vmem>>, vector<1x1x32xf32>
    %13 = vector.shape_cast %12 : vector<1x1x32xf32> to vector<1x32xf32>
    %cst_14 = arith.constant dense<0.000000e+00> : vector<16xf32>
    %14 = vector.multi_reduction <add>, %9, %cst_14 [1] : vector<16x32xf32> to vector<16xf32>
    %15 = vector.shape_cast %14 : vector<16xf32> to vector<16x1xf32>
    %cst_15 = arith.constant 3.200000e+01 : f32
    %16 = vector.broadcast %cst_15 : f32 to vector<16x1xf32>
    %17 = arith.divf %15, %16 : vector<16x1xf32>
    %18 = vector.broadcast %17 : vector<16x1xf32> to vector<16x32xf32>
    %19 = arith.subf %9, %18 : vector<16x32xf32>
    %20 = arith.mulf %19, %19 : vector<16x32xf32>
    %cst_16 = arith.constant dense<0.000000e+00> : vector<16xf32>
    %21 = vector.multi_reduction <add>, %20, %cst_16 [1] : vector<16x32xf32> to vector<16xf32>
    %22 = vector.shape_cast %21 : vector<16xf32> to vector<16x1xf32>
    %cst_17 = arith.constant 3.200000e+01 : f32
    %23 = vector.broadcast %cst_17 : f32 to vector<16x1xf32>
    %24 = arith.divf %22, %23 : vector<16x1xf32>
    %cst_18 = arith.constant 9.99999974E-6 : f32
    %25 = vector.broadcast %cst_18 : f32 to vector<16x1xf32>
    %26 = arith.addf %24, %25 : vector<16x1xf32>
    %27 = math.rsqrt %26 : vector<16x1xf32>
    %28 = vector.broadcast %27 : vector<16x1xf32> to vector<16x32xf32>
    %29 = arith.mulf %19, %28 : vector<16x32xf32>
    %30 = vector.broadcast %11 : vector<1x32xf32> to vector<16x32xf32>
    %31 = arith.mulf %29, %30 : vector<16x32xf32>
    %32 = vector.broadcast %13 : vector<1x32xf32> to vector<16x32xf32>
    %33 = arith.addf %31, %32 : vector<16x32xf32>
    %c0_19 = arith.constant 0 : index
    %c0_20 = arith.constant 0 : index
    %c0_21 = arith.constant 0 : index
    %34 = vector.load %arg7[%c0_19, %c0_20, %c0_21] : memref<2x32x96xbf16, #tpu.memory_space<vmem>>, vector<1x32x96xbf16>
    %35 = vector.shape_cast %34 : vector<1x32x96xbf16> to vector<32x96xbf16>
    %36 = arith.truncf %33 : vector<16x32xf32> to vector<16x32xbf16>
    %cst_22 = arith.constant dense<0.000000e+00> : vector<16x96xf32>
    %37 = tpu.matmul %36, %35, %cst_22 {dimension_numbers = #tpu.dot_dimension_numbers<[1], [0], [0], [1], [0, 0, 1, 1], [], []>} : vector<16x32xbf16>, vector<32x96xbf16>, vector<16x96xf32> -> vector<16x96xf32>
    %c0_23 = arith.constant 0 : index
    %c0_24 = arith.constant 0 : index
    %c0_25 = arith.constant 0 : index
    %38 = vector.load %arg8[%c0_23, %c0_24, %c0_25] : memref<2x1x96xf32, #tpu.memory_space<vmem>>, vector<1x1x96xf32>
    %39 = vector.shape_cast %38 : vector<1x1x96xf32> to vector<1x96xf32>
    %40 = vector.broadcast %39 : vector<1x96xf32> to vector<16x96xf32>
    %41 = arith.addf %37, %40 : vector<16x96xf32>
    %42 = vector.extract_strided_slice %41 {offsets = [0, 0], sizes = [16, 32], strides = [1, 1]} : vector<16x96xf32> to vector<16x32xf32>
    %43 = vector.extract_strided_slice %41 {offsets = [0, 32], sizes = [16, 32], strides = [1, 1]} : vector<16x96xf32> to vector<16x32xf32>
    %44 = vector.extract_strided_slice %41 {offsets = [0, 64], sizes = [16, 32], strides = [1, 1]} : vector<16x96xf32> to vector<16x32xf32>
    %c0_26 = arith.constant 0 : index
    %c0_27 = arith.constant 0 : index
    %c0_28 = arith.constant 0 : index
    %45 = vector.load %arg9[%c0_26, %c0_27, %c0_28] : memref<2x32x32xbf16, #tpu.memory_space<vmem>>, vector<1x32x32xbf16>
    %46 = vector.shape_cast %45 : vector<1x32x32xbf16> to vector<32x32xbf16>
    %cst_29 = arith.constant 0.000000e+00 : f32
    %47 = vector.broadcast %cst_29 : f32 to vector<16x32xf32>
    %48 = vector.extract_strided_slice %42 {offsets = [0, 0], sizes = [16, 8], strides = [1, 1]} : vector<16x32xf32> to vector<16x8xf32>
    %49 = arith.truncf %48 : vector<16x8xf32> to vector<16x8xbf16>
    %50 = vector.extract_strided_slice %43 {offsets = [0, 0], sizes = [16, 8], strides = [1, 1]} : vector<16x32xf32> to vector<16x8xf32>
    %51 = arith.truncf %50 : vector<16x8xf32> to vector<16x8xbf16>
    %52 = vector.extract_strided_slice %44 {offsets = [0, 0], sizes = [16, 8], strides = [1, 1]} : vector<16x32xf32> to vector<16x8xf32>
    %53 = arith.truncf %52 : vector<16x8xf32> to vector<16x8xbf16>
    %cst_30 = arith.constant dense<0.000000e+00> : vector<16x16xf32>
    %54 = tpu.matmul %49, %51, %cst_30 {dimension_numbers = #tpu.dot_dimension_numbers<[1], [1], [0], [0], [0, 0, 1, 0], [], []>} : vector<16x8xbf16>, vector<16x8xbf16>, vector<16x16xf32> -> vector<16x16xf32>
    %cst_31 = arith.constant 0.353553385 : f32
    %55 = vector.broadcast %cst_31 : f32 to vector<16x16xf32>
    %56 = arith.mulf %54, %55 : vector<16x16xf32>
    %cst_32 = arith.constant dense<0xFF800000> : vector<16xf32>
    %57 = vector.multi_reduction <maximumf>, %56, %cst_32 [1] : vector<16x16xf32> to vector<16xf32>
    %58 = vector.shape_cast %57 : vector<16xf32> to vector<16x1xf32>
    %59 = vector.broadcast %58 : vector<16x1xf32> to vector<16x16xf32>
    %60 = arith.subf %56, %59 : vector<16x16xf32>
    %61 = math.exp %60 : vector<16x16xf32>
    %cst_33 = arith.constant dense<0.000000e+00> : vector<16xf32>
    %62 = vector.multi_reduction <add>, %61, %cst_33 [1] : vector<16x16xf32> to vector<16xf32>
    %63 = vector.shape_cast %62 : vector<16xf32> to vector<16x1xf32>
    %64 = tpu.reciprocal %63 {approx = true} : vector<16x1xf32> -> vector<16x1xf32>
    %65 = vector.broadcast %64 : vector<16x1xf32> to vector<16x16xf32>
    %66 = arith.mulf %61, %65 : vector<16x16xf32>
    %67 = arith.truncf %66 : vector<16x16xf32> to vector<16x16xbf16>
    %cst_34 = arith.constant dense<0.000000e+00> : vector<16x8xf32>
    %68 = tpu.matmul %67, %53, %cst_34 {dimension_numbers = #tpu.dot_dimension_numbers<[1], [0], [0], [1], [0, 0, 1, 1], [], []>} : vector<16x16xbf16>, vector<16x8xbf16>, vector<16x8xf32> -> vector<16x8xf32>
    %69 = arith.truncf %68 : vector<16x8xf32> to vector<16x8xbf16>
    %70 = vector.extract_strided_slice %46 {offsets = [0, 0], sizes = [8, 32], strides = [1, 1]} : vector<32x32xbf16> to vector<8x32xbf16>
    %cst_35 = arith.constant dense<0.000000e+00> : vector<16x32xf32>
    %71 = tpu.matmul %69, %70, %cst_35 {dimension_numbers = #tpu.dot_dimension_numbers<[1], [0], [0], [1], [0, 0, 1, 1], [], []>} : vector<16x8xbf16>, vector<8x32xbf16>, vector<16x32xf32> -> vector<16x32xf32>
    %72 = arith.addf %47, %71 : vector<16x32xf32>
    %73 = vector.extract_strided_slice %42 {offsets = [0, 8], sizes = [16, 8], strides = [1, 1]} : vector<16x32xf32> to vector<16x8xf32>
    %74 = arith.truncf %73 : vector<16x8xf32> to vector<16x8xbf16>
    %75 = vector.extract_strided_slice %43 {offsets = [0, 8], sizes = [16, 8], strides = [1, 1]} : vector<16x32xf32> to vector<16x8xf32>
    %76 = arith.truncf %75 : vector<16x8xf32> to vector<16x8xbf16>
    %77 = vector.extract_strided_slice %44 {offsets = [0, 8], sizes = [16, 8], strides = [1, 1]} : vector<16x32xf32> to vector<16x8xf32>
    %78 = arith.truncf %77 : vector<16x8xf32> to vector<16x8xbf16>
    %cst_36 = arith.constant dense<0.000000e+00> : vector<16x16xf32>
    %79 = tpu.matmul %74, %76, %cst_36 {dimension_numbers = #tpu.dot_dimension_numbers<[1], [1], [0], [0], [0, 0, 1, 0], [], []>} : vector<16x8xbf16>, vector<16x8xbf16>, vector<16x16xf32> -> vector<16x16xf32>
    %cst_37 = arith.constant 0.353553385 : f32
    %80 = vector.broadcast %cst_37 : f32 to vector<16x16xf32>
    %81 = arith.mulf %79, %80 : vector<16x16xf32>
    %cst_38 = arith.constant dense<0xFF800000> : vector<16xf32>
    %82 = vector.multi_reduction <maximumf>, %81, %cst_38 [1] : vector<16x16xf32> to vector<16xf32>
    %83 = vector.shape_cast %82 : vector<16xf32> to vector<16x1xf32>
    %84 = vector.broadcast %83 : vector<16x1xf32> to vector<16x16xf32>
    %85 = arith.subf %81, %84 : vector<16x16xf32>
    %86 = math.exp %85 : vector<16x16xf32>
    %cst_39 = arith.constant dense<0.000000e+00> : vector<16xf32>
    %87 = vector.multi_reduction <add>, %86, %cst_39 [1] : vector<16x16xf32> to vector<16xf32>
    %88 = vector.shape_cast %87 : vector<16xf32> to vector<16x1xf32>
    %89 = tpu.reciprocal %88 {approx = true} : vector<16x1xf32> -> vector<16x1xf32>
    %90 = vector.broadcast %89 : vector<16x1xf32> to vector<16x16xf32>
    %91 = arith.mulf %86, %90 : vector<16x16xf32>
    %92 = arith.truncf %91 : vector<16x16xf32> to vector<16x16xbf16>
    %cst_40 = arith.constant dense<0.000000e+00> : vector<16x8xf32>
    %93 = tpu.matmul %92, %78, %cst_40 {dimension_numbers = #tpu.dot_dimension_numbers<[1], [0], [0], [1], [0, 0, 1, 1], [], []>} : vector<16x16xbf16>, vector<16x8xbf16>, vector<16x8xf32> -> vector<16x8xf32>
    %94 = arith.truncf %93 : vector<16x8xf32> to vector<16x8xbf16>
    %95 = vector.extract_strided_slice %46 {offsets = [8, 0], sizes = [8, 32], strides = [1, 1]} : vector<32x32xbf16> to vector<8x32xbf16>
    %cst_41 = arith.constant dense<0.000000e+00> : vector<16x32xf32>
    %96 = tpu.matmul %94, %95, %cst_41 {dimension_numbers = #tpu.dot_dimension_numbers<[1], [0], [0], [1], [0, 0, 1, 1], [], []>} : vector<16x8xbf16>, vector<8x32xbf16>, vector<16x32xf32> -> vector<16x32xf32>
    %97 = arith.addf %72, %96 : vector<16x32xf32>
    %98 = vector.extract_strided_slice %42 {offsets = [0, 16], sizes = [16, 8], strides = [1, 1]} : vector<16x32xf32> to vector<16x8xf32>
    %99 = arith.truncf %98 : vector<16x8xf32> to vector<16x8xbf16>
    %100 = vector.extract_strided_slice %43 {offsets = [0, 16], sizes = [16, 8], strides = [1, 1]} : vector<16x32xf32> to vector<16x8xf32>
    %101 = arith.truncf %100 : vector<16x8xf32> to vector<16x8xbf16>
    %102 = vector.extract_strided_slice %44 {offsets = [0, 16], sizes = [16, 8], strides = [1, 1]} : vector<16x32xf32> to vector<16x8xf32>
    %103 = arith.truncf %102 : vector<16x8xf32> to vector<16x8xbf16>
    %cst_42 = arith.constant dense<0.000000e+00> : vector<16x16xf32>
    %104 = tpu.matmul %99, %101, %cst_42 {dimension_numbers = #tpu.dot_dimension_numbers<[1], [1], [0], [0], [0, 0, 1, 0], [], []>} : vector<16x8xbf16>, vector<16x8xbf16>, vector<16x16xf32> -> vector<16x16xf32>
    %cst_43 = arith.constant 0.353553385 : f32
    %105 = vector.broadcast %cst_43 : f32 to vector<16x16xf32>
    %106 = arith.mulf %104, %105 : vector<16x16xf32>
    %cst_44 = arith.constant dense<0xFF800000> : vector<16xf32>
    %107 = vector.multi_reduction <maximumf>, %106, %cst_44 [1] : vector<16x16xf32> to vector<16xf32>
    %108 = vector.shape_cast %107 : vector<16xf32> to vector<16x1xf32>
    %109 = vector.broadcast %108 : vector<16x1xf32> to vector<16x16xf32>
    %110 = arith.subf %106, %109 : vector<16x16xf32>
    %111 = math.exp %110 : vector<16x16xf32>
    %cst_45 = arith.constant dense<0.000000e+00> : vector<16xf32>
    %112 = vector.multi_reduction <add>, %111, %cst_45 [1] : vector<16x16xf32> to vector<16xf32>
    %113 = vector.shape_cast %112 : vector<16xf32> to vector<16x1xf32>
    %114 = tpu.reciprocal %113 {approx = true} : vector<16x1xf32> -> vector<16x1xf32>
    %115 = vector.broadcast %114 : vector<16x1xf32> to vector<16x16xf32>
    %116 = arith.mulf %111, %115 : vector<16x16xf32>
    %117 = arith.truncf %116 : vector<16x16xf32> to vector<16x16xbf16>
    %cst_46 = arith.constant dense<0.000000e+00> : vector<16x8xf32>
    %118 = tpu.matmul %117, %103, %cst_46 {dimension_numbers = #tpu.dot_dimension_numbers<[1], [0], [0], [1], [0, 0, 1, 1], [], []>} : vector<16x16xbf16>, vector<16x8xbf16>, vector<16x8xf32> -> vector<16x8xf32>
    %119 = arith.truncf %118 : vector<16x8xf32> to vector<16x8xbf16>
    %120 = vector.extract_strided_slice %46 {offsets = [16, 0], sizes = [8, 32], strides = [1, 1]} : vector<32x32xbf16> to vector<8x32xbf16>
    %cst_47 = arith.constant dense<0.000000e+00> : vector<16x32xf32>
    %121 = tpu.matmul %119, %120, %cst_47 {dimension_numbers = #tpu.dot_dimension_numbers<[1], [0], [0], [1], [0, 0, 1, 1], [], []>} : vector<16x8xbf16>, vector<8x32xbf16>, vector<16x32xf32> -> vector<16x32xf32>
    %122 = arith.addf %97, %121 : vector<16x32xf32>
    %123 = vector.extract_strided_slice %42 {offsets = [0, 24], sizes = [16, 8], strides = [1, 1]} : vector<16x32xf32> to vector<16x8xf32>
    %124 = arith.truncf %123 : vector<16x8xf32> to vector<16x8xbf16>
    %125 = vector.extract_strided_slice %43 {offsets = [0, 24], sizes = [16, 8], strides = [1, 1]} : vector<16x32xf32> to vector<16x8xf32>
    %126 = arith.truncf %125 : vector<16x8xf32> to vector<16x8xbf16>
    %127 = vector.extract_strided_slice %44 {offsets = [0, 24], sizes = [16, 8], strides = [1, 1]} : vector<16x32xf32> to vector<16x8xf32>
    %128 = arith.truncf %127 : vector<16x8xf32> to vector<16x8xbf16>
    %cst_48 = arith.constant dense<0.000000e+00> : vector<16x16xf32>
    %129 = tpu.matmul %124, %126, %cst_48 {dimension_numbers = #tpu.dot_dimension_numbers<[1], [1], [0], [0], [0, 0, 1, 0], [], []>} : vector<16x8xbf16>, vector<16x8xbf16>, vector<16x16xf32> -> vector<16x16xf32>
    %cst_49 = arith.constant 0.353553385 : f32
    %130 = vector.broadcast %cst_49 : f32 to vector<16x16xf32>
    %131 = arith.mulf %129, %130 : vector<16x16xf32>
    %cst_50 = arith.constant dense<0xFF800000> : vector<16xf32>
    %132 = vector.multi_reduction <maximumf>, %131, %cst_50 [1] : vector<16x16xf32> to vector<16xf32>
    %133 = vector.shape_cast %132 : vector<16xf32> to vector<16x1xf32>
    %134 = vector.broadcast %133 : vector<16x1xf32> to vector<16x16xf32>
    %135 = arith.subf %131, %134 : vector<16x16xf32>
    %136 = math.exp %135 : vector<16x16xf32>
    %cst_51 = arith.constant dense<0.000000e+00> : vector<16xf32>
    %137 = vector.multi_reduction <add>, %136, %cst_51 [1] : vector<16x16xf32> to vector<16xf32>
    %138 = vector.shape_cast %137 : vector<16xf32> to vector<16x1xf32>
    %139 = tpu.reciprocal %138 {approx = true} : vector<16x1xf32> -> vector<16x1xf32>
    %140 = vector.broadcast %139 : vector<16x1xf32> to vector<16x16xf32>
    %141 = arith.mulf %136, %140 : vector<16x16xf32>
    %142 = arith.truncf %141 : vector<16x16xf32> to vector<16x16xbf16>
    %cst_52 = arith.constant dense<0.000000e+00> : vector<16x8xf32>
    %143 = tpu.matmul %142, %128, %cst_52 {dimension_numbers = #tpu.dot_dimension_numbers<[1], [0], [0], [1], [0, 0, 1, 1], [], []>} : vector<16x16xbf16>, vector<16x8xbf16>, vector<16x8xf32> -> vector<16x8xf32>
    %144 = arith.truncf %143 : vector<16x8xf32> to vector<16x8xbf16>
    %145 = vector.extract_strided_slice %46 {offsets = [24, 0], sizes = [8, 32], strides = [1, 1]} : vector<32x32xbf16> to vector<8x32xbf16>
    %cst_53 = arith.constant dense<0.000000e+00> : vector<16x32xf32>
    %146 = tpu.matmul %144, %145, %cst_53 {dimension_numbers = #tpu.dot_dimension_numbers<[1], [0], [0], [1], [0, 0, 1, 1], [], []>} : vector<16x8xbf16>, vector<8x32xbf16>, vector<16x32xf32> -> vector<16x32xf32>
    %147 = arith.addf %122, %146 : vector<16x32xf32>
    %148 = arith.addf %9, %147 : vector<16x32xf32>
    %c0_54 = arith.constant 0 : index
    %c0_55 = arith.constant 0 : index
    %c0_56 = arith.constant 0 : index
    %149 = vector.load %arg10[%c0_54, %c0_55, %c0_56] : memref<2x1x32xf32, #tpu.memory_space<vmem>>, vector<1x1x32xf32>
    %150 = vector.shape_cast %149 : vector<1x1x32xf32> to vector<1x32xf32>
    %151 = vector.broadcast %150 : vector<1x32xf32> to vector<16x32xf32>
    %152 = arith.addf %148, %151 : vector<16x32xf32>
    %c0_57 = arith.constant 0 : index
    %c0_58 = arith.constant 0 : index
    %c0_59 = arith.constant 0 : index
    %153 = vector.load %arg11[%c0_57, %c0_58, %c0_59] : memref<2x1x32xf32, #tpu.memory_space<vmem>>, vector<1x1x32xf32>
    %154 = vector.shape_cast %153 : vector<1x1x32xf32> to vector<1x32xf32>
    %c0_60 = arith.constant 0 : index
    %c0_61 = arith.constant 0 : index
    %c0_62 = arith.constant 0 : index
    %155 = vector.load %arg12[%c0_60, %c0_61, %c0_62] : memref<2x1x32xf32, #tpu.memory_space<vmem>>, vector<1x1x32xf32>
    %156 = vector.shape_cast %155 : vector<1x1x32xf32> to vector<1x32xf32>
    %cst_63 = arith.constant dense<0.000000e+00> : vector<16xf32>
    %157 = vector.multi_reduction <add>, %152, %cst_63 [1] : vector<16x32xf32> to vector<16xf32>
    %158 = vector.shape_cast %157 : vector<16xf32> to vector<16x1xf32>
    %cst_64 = arith.constant 3.200000e+01 : f32
    %159 = vector.broadcast %cst_64 : f32 to vector<16x1xf32>
    %160 = arith.divf %158, %159 : vector<16x1xf32>
    %161 = vector.broadcast %160 : vector<16x1xf32> to vector<16x32xf32>
    %162 = arith.subf %152, %161 : vector<16x32xf32>
    %163 = arith.mulf %162, %162 : vector<16x32xf32>
    %cst_65 = arith.constant dense<0.000000e+00> : vector<16xf32>
    %164 = vector.multi_reduction <add>, %163, %cst_65 [1] : vector<16x32xf32> to vector<16xf32>
    %165 = vector.shape_cast %164 : vector<16xf32> to vector<16x1xf32>
    %cst_66 = arith.constant 3.200000e+01 : f32
    %166 = vector.broadcast %cst_66 : f32 to vector<16x1xf32>
    %167 = arith.divf %165, %166 : vector<16x1xf32>
    %cst_67 = arith.constant 9.99999974E-6 : f32
    %168 = vector.broadcast %cst_67 : f32 to vector<16x1xf32>
    %169 = arith.addf %167, %168 : vector<16x1xf32>
    %170 = math.rsqrt %169 : vector<16x1xf32>
    %171 = vector.broadcast %170 : vector<16x1xf32> to vector<16x32xf32>
    %172 = arith.mulf %162, %171 : vector<16x32xf32>
    %173 = vector.broadcast %154 : vector<1x32xf32> to vector<16x32xf32>
    %174 = arith.mulf %172, %173 : vector<16x32xf32>
    %175 = vector.broadcast %156 : vector<1x32xf32> to vector<16x32xf32>
    %176 = arith.addf %174, %175 : vector<16x32xf32>
    %c0_68 = arith.constant 0 : index
    %c0_69 = arith.constant 0 : index
    %c0_70 = arith.constant 0 : index
    %177 = vector.load %arg13[%c0_68, %c0_69, %c0_70] : memref<2x32x128xbf16, #tpu.memory_space<vmem>>, vector<1x32x128xbf16>
    %178 = vector.shape_cast %177 : vector<1x32x128xbf16> to vector<32x128xbf16>
    %179 = arith.truncf %176 : vector<16x32xf32> to vector<16x32xbf16>
    %cst_71 = arith.constant dense<0.000000e+00> : vector<16x128xf32>
    %180 = tpu.matmul %179, %178, %cst_71 {dimension_numbers = #tpu.dot_dimension_numbers<[1], [0], [0], [1], [0, 0, 1, 1], [], []>} : vector<16x32xbf16>, vector<32x128xbf16>, vector<16x128xf32> -> vector<16x128xf32>
    %c0_72 = arith.constant 0 : index
    %c0_73 = arith.constant 0 : index
    %c0_74 = arith.constant 0 : index
    %181 = vector.load %arg14[%c0_72, %c0_73, %c0_74] : memref<2x1x128xf32, #tpu.memory_space<vmem>>, vector<1x1x128xf32>
    %182 = vector.shape_cast %181 : vector<1x1x128xf32> to vector<1x128xf32>
    %183 = vector.broadcast %182 : vector<1x128xf32> to vector<16x128xf32>
    %184 = arith.addf %180, %183 : vector<16x128xf32>
    %185 = arith.mulf %184, %184 : vector<16x128xf32>
    %186 = arith.mulf %184, %185 : vector<16x128xf32>
    %cst_75 = arith.constant 4.471500e-02 : f32
    %187 = vector.broadcast %cst_75 : f32 to vector<16x128xf32>
    %188 = arith.mulf %187, %186 : vector<16x128xf32>
    %189 = arith.addf %184, %188 : vector<16x128xf32>
    %cst_76 = arith.constant 0.797884583 : f32
    %190 = vector.broadcast %cst_76 : f32 to vector<16x128xf32>
    %191 = arith.mulf %190, %189 : vector<16x128xf32>
    %192 = math.tanh %191 : vector<16x128xf32>
    %cst_77 = arith.constant 1.000000e+00 : f32
    %193 = vector.broadcast %cst_77 : f32 to vector<16x128xf32>
    %194 = arith.addf %193, %192 : vector<16x128xf32>
    %cst_78 = arith.constant 5.000000e-01 : f32
    %195 = vector.broadcast %cst_78 : f32 to vector<16x128xf32>
    %196 = arith.mulf %195, %194 : vector<16x128xf32>
    %197 = arith.mulf %184, %196 : vector<16x128xf32>
    %c0_79 = arith.constant 0 : index
    %c0_80 = arith.constant 0 : index
    %c0_81 = arith.constant 0 : index
    %198 = vector.load %arg15[%c0_79, %c0_80, %c0_81] : memref<2x128x32xbf16, #tpu.memory_space<vmem>>, vector<1x128x32xbf16>
    %199 = vector.shape_cast %198 : vector<1x128x32xbf16> to vector<128x32xbf16>
    %200 = arith.truncf %197 : vector<16x128xf32> to vector<16x128xbf16>
    %cst_82 = arith.constant dense<0.000000e+00> : vector<16x32xf32>
    %201 = tpu.matmul %200, %199, %cst_82 {dimension_numbers = #tpu.dot_dimension_numbers<[1], [0], [0], [1], [0, 0, 1, 1], [], []>} : vector<16x128xbf16>, vector<128x32xbf16>, vector<16x32xf32> -> vector<16x32xf32>
    %202 = arith.addf %152, %201 : vector<16x32xf32>
    %c0_83 = arith.constant 0 : index
    %c0_84 = arith.constant 0 : index
    %c0_85 = arith.constant 0 : index
    %203 = vector.load %arg16[%c0_83, %c0_84, %c0_85] : memref<2x1x32xf32, #tpu.memory_space<vmem>>, vector<1x1x32xf32>
    %204 = vector.shape_cast %203 : vector<1x1x32xf32> to vector<1x32xf32>
    %205 = vector.broadcast %204 : vector<1x32xf32> to vector<16x32xf32>
    %206 = arith.addf %202, %205 : vector<16x32xf32>
    %c1 = arith.constant 1 : index
    %c0_86 = arith.constant 0 : index
    %c0_87 = arith.constant 0 : index
    %207 = vector.load %arg5[%c1, %c0_86, %c0_87] : memref<2x1x32xf32, #tpu.memory_space<vmem>>, vector<1x1x32xf32>
    %208 = vector.shape_cast %207 : vector<1x1x32xf32> to vector<1x32xf32>
    %c1_88 = arith.constant 1 : index
    %c0_89 = arith.constant 0 : index
    %c0_90 = arith.constant 0 : index
    %209 = vector.load %arg6[%c1_88, %c0_89, %c0_90] : memref<2x1x32xf32, #tpu.memory_space<vmem>>, vector<1x1x32xf32>
    %210 = vector.shape_cast %209 : vector<1x1x32xf32> to vector<1x32xf32>
    %cst_91 = arith.constant dense<0.000000e+00> : vector<16xf32>
    %211 = vector.multi_reduction <add>, %206, %cst_91 [1] : vector<16x32xf32> to vector<16xf32>
    %212 = vector.shape_cast %211 : vector<16xf32> to vector<16x1xf32>
    %cst_92 = arith.constant 3.200000e+01 : f32
    %213 = vector.broadcast %cst_92 : f32 to vector<16x1xf32>
    %214 = arith.divf %212, %213 : vector<16x1xf32>
    %215 = vector.broadcast %214 : vector<16x1xf32> to vector<16x32xf32>
    %216 = arith.subf %206, %215 : vector<16x32xf32>
    %217 = arith.mulf %216, %216 : vector<16x32xf32>
    %cst_93 = arith.constant dense<0.000000e+00> : vector<16xf32>
    %218 = vector.multi_reduction <add>, %217, %cst_93 [1] : vector<16x32xf32> to vector<16xf32>
    %219 = vector.shape_cast %218 : vector<16xf32> to vector<16x1xf32>
    %cst_94 = arith.constant 3.200000e+01 : f32
    %220 = vector.broadcast %cst_94 : f32 to vector<16x1xf32>
    %221 = arith.divf %219, %220 : vector<16x1xf32>
    %cst_95 = arith.constant 9.99999974E-6 : f32
    %222 = vector.broadcast %cst_95 : f32 to vector<16x1xf32>
    %223 = arith.addf %221, %222 : vector<16x1xf32>
    %224 = math.rsqrt %223 : vector<16x1xf32>
    %225 = vector.broadcast %224 : vector<16x1xf32> to vector<16x32xf32>
    %226 = arith.mulf %216, %225 : vector<16x32xf32>
    %227 = vector.broadcast %208 : vector<1x32xf32> to vector<16x32xf32>
    %228 = arith.mulf %226, %227 : vector<16x32xf32>
    %229 = vector.broadcast %210 : vector<1x32xf32> to vector<16x32xf32>
    %230 = arith.addf %228, %229 : vector<16x32xf32>
    %c1_96 = arith.constant 1 : index
    %c0_97 = arith.constant 0 : index
    %c0_98 = arith.constant 0 : index
    %231 = vector.load %arg7[%c1_96, %c0_97, %c0_98] : memref<2x32x96xbf16, #tpu.memory_space<vmem>>, vector<1x32x96xbf16>
    %232 = vector.shape_cast %231 : vector<1x32x96xbf16> to vector<32x96xbf16>
    %233 = arith.truncf %230 : vector<16x32xf32> to vector<16x32xbf16>
    %cst_99 = arith.constant dense<0.000000e+00> : vector<16x96xf32>
    %234 = tpu.matmul %233, %232, %cst_99 {dimension_numbers = #tpu.dot_dimension_numbers<[1], [0], [0], [1], [0, 0, 1, 1], [], []>} : vector<16x32xbf16>, vector<32x96xbf16>, vector<16x96xf32> -> vector<16x96xf32>
    %c1_100 = arith.constant 1 : index
    %c0_101 = arith.constant 0 : index
    %c0_102 = arith.constant 0 : index
    %235 = vector.load %arg8[%c1_100, %c0_101, %c0_102] : memref<2x1x96xf32, #tpu.memory_space<vmem>>, vector<1x1x96xf32>
    %236 = vector.shape_cast %235 : vector<1x1x96xf32> to vector<1x96xf32>
    %237 = vector.broadcast %236 : vector<1x96xf32> to vector<16x96xf32>
    %238 = arith.addf %234, %237 : vector<16x96xf32>
    %239 = vector.extract_strided_slice %238 {offsets = [0, 0], sizes = [16, 32], strides = [1, 1]} : vector<16x96xf32> to vector<16x32xf32>
    %240 = vector.extract_strided_slice %238 {offsets = [0, 32], sizes = [16, 32], strides = [1, 1]} : vector<16x96xf32> to vector<16x32xf32>
    %241 = vector.extract_strided_slice %238 {offsets = [0, 64], sizes = [16, 32], strides = [1, 1]} : vector<16x96xf32> to vector<16x32xf32>
    %c1_103 = arith.constant 1 : index
    %c0_104 = arith.constant 0 : index
    %c0_105 = arith.constant 0 : index
    %242 = vector.load %arg9[%c1_103, %c0_104, %c0_105] : memref<2x32x32xbf16, #tpu.memory_space<vmem>>, vector<1x32x32xbf16>
    %243 = vector.shape_cast %242 : vector<1x32x32xbf16> to vector<32x32xbf16>
    %cst_106 = arith.constant 0.000000e+00 : f32
    %244 = vector.broadcast %cst_106 : f32 to vector<16x32xf32>
    %245 = vector.extract_strided_slice %239 {offsets = [0, 0], sizes = [16, 8], strides = [1, 1]} : vector<16x32xf32> to vector<16x8xf32>
    %246 = arith.truncf %245 : vector<16x8xf32> to vector<16x8xbf16>
    %247 = vector.extract_strided_slice %240 {offsets = [0, 0], sizes = [16, 8], strides = [1, 1]} : vector<16x32xf32> to vector<16x8xf32>
    %248 = arith.truncf %247 : vector<16x8xf32> to vector<16x8xbf16>
    %249 = vector.extract_strided_slice %241 {offsets = [0, 0], sizes = [16, 8], strides = [1, 1]} : vector<16x32xf32> to vector<16x8xf32>
    %250 = arith.truncf %249 : vector<16x8xf32> to vector<16x8xbf16>
    %cst_107 = arith.constant dense<0.000000e+00> : vector<16x16xf32>
    %251 = tpu.matmul %246, %248, %cst_107 {dimension_numbers = #tpu.dot_dimension_numbers<[1], [1], [0], [0], [0, 0, 1, 0], [], []>} : vector<16x8xbf16>, vector<16x8xbf16>, vector<16x16xf32> -> vector<16x16xf32>
    %cst_108 = arith.constant 0.353553385 : f32
    %252 = vector.broadcast %cst_108 : f32 to vector<16x16xf32>
    %253 = arith.mulf %251, %252 : vector<16x16xf32>
    %cst_109 = arith.constant dense<0xFF800000> : vector<16xf32>
    %254 = vector.multi_reduction <maximumf>, %253, %cst_109 [1] : vector<16x16xf32> to vector<16xf32>
    %255 = vector.shape_cast %254 : vector<16xf32> to vector<16x1xf32>
    %256 = vector.broadcast %255 : vector<16x1xf32> to vector<16x16xf32>
    %257 = arith.subf %253, %256 : vector<16x16xf32>
    %258 = math.exp %257 : vector<16x16xf32>
    %cst_110 = arith.constant dense<0.000000e+00> : vector<16xf32>
    %259 = vector.multi_reduction <add>, %258, %cst_110 [1] : vector<16x16xf32> to vector<16xf32>
    %260 = vector.shape_cast %259 : vector<16xf32> to vector<16x1xf32>
    %261 = tpu.reciprocal %260 {approx = true} : vector<16x1xf32> -> vector<16x1xf32>
    %262 = vector.broadcast %261 : vector<16x1xf32> to vector<16x16xf32>
    %263 = arith.mulf %258, %262 : vector<16x16xf32>
    %264 = arith.truncf %263 : vector<16x16xf32> to vector<16x16xbf16>
    %cst_111 = arith.constant dense<0.000000e+00> : vector<16x8xf32>
    %265 = tpu.matmul %264, %250, %cst_111 {dimension_numbers = #tpu.dot_dimension_numbers<[1], [0], [0], [1], [0, 0, 1, 1], [], []>} : vector<16x16xbf16>, vector<16x8xbf16>, vector<16x8xf32> -> vector<16x8xf32>
    %266 = arith.truncf %265 : vector<16x8xf32> to vector<16x8xbf16>
    %267 = vector.extract_strided_slice %243 {offsets = [0, 0], sizes = [8, 32], strides = [1, 1]} : vector<32x32xbf16> to vector<8x32xbf16>
    %cst_112 = arith.constant dense<0.000000e+00> : vector<16x32xf32>
    %268 = tpu.matmul %266, %267, %cst_112 {dimension_numbers = #tpu.dot_dimension_numbers<[1], [0], [0], [1], [0, 0, 1, 1], [], []>} : vector<16x8xbf16>, vector<8x32xbf16>, vector<16x32xf32> -> vector<16x32xf32>
    %269 = arith.addf %244, %268 : vector<16x32xf32>
    %270 = vector.extract_strided_slice %239 {offsets = [0, 8], sizes = [16, 8], strides = [1, 1]} : vector<16x32xf32> to vector<16x8xf32>
    %271 = arith.truncf %270 : vector<16x8xf32> to vector<16x8xbf16>
    %272 = vector.extract_strided_slice %240 {offsets = [0, 8], sizes = [16, 8], strides = [1, 1]} : vector<16x32xf32> to vector<16x8xf32>
    %273 = arith.truncf %272 : vector<16x8xf32> to vector<16x8xbf16>
    %274 = vector.extract_strided_slice %241 {offsets = [0, 8], sizes = [16, 8], strides = [1, 1]} : vector<16x32xf32> to vector<16x8xf32>
    %275 = arith.truncf %274 : vector<16x8xf32> to vector<16x8xbf16>
    %cst_113 = arith.constant dense<0.000000e+00> : vector<16x16xf32>
    %276 = tpu.matmul %271, %273, %cst_113 {dimension_numbers = #tpu.dot_dimension_numbers<[1], [1], [0], [0], [0, 0, 1, 0], [], []>} : vector<16x8xbf16>, vector<16x8xbf16>, vector<16x16xf32> -> vector<16x16xf32>
    %cst_114 = arith.constant 0.353553385 : f32
    %277 = vector.broadcast %cst_114 : f32 to vector<16x16xf32>
    %278 = arith.mulf %276, %277 : vector<16x16xf32>
    %cst_115 = arith.constant dense<0xFF800000> : vector<16xf32>
    %279 = vector.multi_reduction <maximumf>, %278, %cst_115 [1] : vector<16x16xf32> to vector<16xf32>
    %280 = vector.shape_cast %279 : vector<16xf32> to vector<16x1xf32>
    %281 = vector.broadcast %280 : vector<16x1xf32> to vector<16x16xf32>
    %282 = arith.subf %278, %281 : vector<16x16xf32>
    %283 = math.exp %282 : vector<16x16xf32>
    %cst_116 = arith.constant dense<0.000000e+00> : vector<16xf32>
    %284 = vector.multi_reduction <add>, %283, %cst_116 [1] : vector<16x16xf32> to vector<16xf32>
    %285 = vector.shape_cast %284 : vector<16xf32> to vector<16x1xf32>
    %286 = tpu.reciprocal %285 {approx = true} : vector<16x1xf32> -> vector<16x1xf32>
    %287 = vector.broadcast %286 : vector<16x1xf32> to vector<16x16xf32>
    %288 = arith.mulf %283, %287 : vector<16x16xf32>
    %289 = arith.truncf %288 : vector<16x16xf32> to vector<16x16xbf16>
    %cst_117 = arith.constant dense<0.000000e+00> : vector<16x8xf32>
    %290 = tpu.matmul %289, %275, %cst_117 {dimension_numbers = #tpu.dot_dimension_numbers<[1], [0], [0], [1], [0, 0, 1, 1], [], []>} : vector<16x16xbf16>, vector<16x8xbf16>, vector<16x8xf32> -> vector<16x8xf32>
    %291 = arith.truncf %290 : vector<16x8xf32> to vector<16x8xbf16>
    %292 = vector.extract_strided_slice %243 {offsets = [8, 0], sizes = [8, 32], strides = [1, 1]} : vector<32x32xbf16> to vector<8x32xbf16>
    %cst_118 = arith.constant dense<0.000000e+00> : vector<16x32xf32>
    %293 = tpu.matmul %291, %292, %cst_118 {dimension_numbers = #tpu.dot_dimension_numbers<[1], [0], [0], [1], [0, 0, 1, 1], [], []>} : vector<16x8xbf16>, vector<8x32xbf16>, vector<16x32xf32> -> vector<16x32xf32>
    %294 = arith.addf %269, %293 : vector<16x32xf32>
    %295 = vector.extract_strided_slice %239 {offsets = [0, 16], sizes = [16, 8], strides = [1, 1]} : vector<16x32xf32> to vector<16x8xf32>
    %296 = arith.truncf %295 : vector<16x8xf32> to vector<16x8xbf16>
    %297 = vector.extract_strided_slice %240 {offsets = [0, 16], sizes = [16, 8], strides = [1, 1]} : vector<16x32xf32> to vector<16x8xf32>
    %298 = arith.truncf %297 : vector<16x8xf32> to vector<16x8xbf16>
    %299 = vector.extract_strided_slice %241 {offsets = [0, 16], sizes = [16, 8], strides = [1, 1]} : vector<16x32xf32> to vector<16x8xf32>
    %300 = arith.truncf %299 : vector<16x8xf32> to vector<16x8xbf16>
    %cst_119 = arith.constant dense<0.000000e+00> : vector<16x16xf32>
    %301 = tpu.matmul %296, %298, %cst_119 {dimension_numbers = #tpu.dot_dimension_numbers<[1], [1], [0], [0], [0, 0, 1, 0], [], []>} : vector<16x8xbf16>, vector<16x8xbf16>, vector<16x16xf32> -> vector<16x16xf32>
    %cst_120 = arith.constant 0.353553385 : f32
    %302 = vector.broadcast %cst_120 : f32 to vector<16x16xf32>
    %303 = arith.mulf %301, %302 : vector<16x16xf32>
    %cst_121 = arith.constant dense<0xFF800000> : vector<16xf32>
    %304 = vector.multi_reduction <maximumf>, %303, %cst_121 [1] : vector<16x16xf32> to vector<16xf32>
    %305 = vector.shape_cast %304 : vector<16xf32> to vector<16x1xf32>
    %306 = vector.broadcast %305 : vector<16x1xf32> to vector<16x16xf32>
    %307 = arith.subf %303, %306 : vector<16x16xf32>
    %308 = math.exp %307 : vector<16x16xf32>
    %cst_122 = arith.constant dense<0.000000e+00> : vector<16xf32>
    %309 = vector.multi_reduction <add>, %308, %cst_122 [1] : vector<16x16xf32> to vector<16xf32>
    %310 = vector.shape_cast %309 : vector<16xf32> to vector<16x1xf32>
    %311 = tpu.reciprocal %310 {approx = true} : vector<16x1xf32> -> vector<16x1xf32>
    %312 = vector.broadcast %311 : vector<16x1xf32> to vector<16x16xf32>
    %313 = arith.mulf %308, %312 : vector<16x16xf32>
    %314 = arith.truncf %313 : vector<16x16xf32> to vector<16x16xbf16>
    %cst_123 = arith.constant dense<0.000000e+00> : vector<16x8xf32>
    %315 = tpu.matmul %314, %300, %cst_123 {dimension_numbers = #tpu.dot_dimension_numbers<[1], [0], [0], [1], [0, 0, 1, 1], [], []>} : vector<16x16xbf16>, vector<16x8xbf16>, vector<16x8xf32> -> vector<16x8xf32>
    %316 = arith.truncf %315 : vector<16x8xf32> to vector<16x8xbf16>
    %317 = vector.extract_strided_slice %243 {offsets = [16, 0], sizes = [8, 32], strides = [1, 1]} : vector<32x32xbf16> to vector<8x32xbf16>
    %cst_124 = arith.constant dense<0.000000e+00> : vector<16x32xf32>
    %318 = tpu.matmul %316, %317, %cst_124 {dimension_numbers = #tpu.dot_dimension_numbers<[1], [0], [0], [1], [0, 0, 1, 1], [], []>} : vector<16x8xbf16>, vector<8x32xbf16>, vector<16x32xf32> -> vector<16x32xf32>
    %319 = arith.addf %294, %318 : vector<16x32xf32>
    %320 = vector.extract_strided_slice %239 {offsets = [0, 24], sizes = [16, 8], strides = [1, 1]} : vector<16x32xf32> to vector<16x8xf32>
    %321 = arith.truncf %320 : vector<16x8xf32> to vector<16x8xbf16>
    %322 = vector.extract_strided_slice %240 {offsets = [0, 24], sizes = [16, 8], strides = [1, 1]} : vector<16x32xf32> to vector<16x8xf32>
    %323 = arith.truncf %322 : vector<16x8xf32> to vector<16x8xbf16>
    %324 = vector.extract_strided_slice %241 {offsets = [0, 24], sizes = [16, 8], strides = [1, 1]} : vector<16x32xf32> to vector<16x8xf32>
    %325 = arith.truncf %324 : vector<16x8xf32> to vector<16x8xbf16>
    %cst_125 = arith.constant dense<0.000000e+00> : vector<16x16xf32>
    %326 = tpu.matmul %321, %323, %cst_125 {dimension_numbers = #tpu.dot_dimension_numbers<[1], [1], [0], [0], [0, 0, 1, 0], [], []>} : vector<16x8xbf16>, vector<16x8xbf16>, vector<16x16xf32> -> vector<16x16xf32>
    %cst_126 = arith.constant 0.353553385 : f32
    %327 = vector.broadcast %cst_126 : f32 to vector<16x16xf32>
    %328 = arith.mulf %326, %327 : vector<16x16xf32>
    %cst_127 = arith.constant dense<0xFF800000> : vector<16xf32>
    %329 = vector.multi_reduction <maximumf>, %328, %cst_127 [1] : vector<16x16xf32> to vector<16xf32>
    %330 = vector.shape_cast %329 : vector<16xf32> to vector<16x1xf32>
    %331 = vector.broadcast %330 : vector<16x1xf32> to vector<16x16xf32>
    %332 = arith.subf %328, %331 : vector<16x16xf32>
    %333 = math.exp %332 : vector<16x16xf32>
    %cst_128 = arith.constant dense<0.000000e+00> : vector<16xf32>
    %334 = vector.multi_reduction <add>, %333, %cst_128 [1] : vector<16x16xf32> to vector<16xf32>
    %335 = vector.shape_cast %334 : vector<16xf32> to vector<16x1xf32>
    %336 = tpu.reciprocal %335 {approx = true} : vector<16x1xf32> -> vector<16x1xf32>
    %337 = vector.broadcast %336 : vector<16x1xf32> to vector<16x16xf32>
    %338 = arith.mulf %333, %337 : vector<16x16xf32>
    %339 = arith.truncf %338 : vector<16x16xf32> to vector<16x16xbf16>
    %cst_129 = arith.constant dense<0.000000e+00> : vector<16x8xf32>
    %340 = tpu.matmul %339, %325, %cst_129 {dimension_numbers = #tpu.dot_dimension_numbers<[1], [0], [0], [1], [0, 0, 1, 1], [], []>} : vector<16x16xbf16>, vector<16x8xbf16>, vector<16x8xf32> -> vector<16x8xf32>
    %341 = arith.truncf %340 : vector<16x8xf32> to vector<16x8xbf16>
    %342 = vector.extract_strided_slice %243 {offsets = [24, 0], sizes = [8, 32], strides = [1, 1]} : vector<32x32xbf16> to vector<8x32xbf16>
    %cst_130 = arith.constant dense<0.000000e+00> : vector<16x32xf32>
    %343 = tpu.matmul %341, %342, %cst_130 {dimension_numbers = #tpu.dot_dimension_numbers<[1], [0], [0], [1], [0, 0, 1, 1], [], []>} : vector<16x8xbf16>, vector<8x32xbf16>, vector<16x32xf32> -> vector<16x32xf32>
    %344 = arith.addf %319, %343 : vector<16x32xf32>
    %345 = arith.addf %206, %344 : vector<16x32xf32>
    %c1_131 = arith.constant 1 : index
    %c0_132 = arith.constant 0 : index
    %c0_133 = arith.constant 0 : index
    %346 = vector.load %arg10[%c1_131, %c0_132, %c0_133] : memref<2x1x32xf32, #tpu.memory_space<vmem>>, vector<1x1x32xf32>
    %347 = vector.shape_cast %346 : vector<1x1x32xf32> to vector<1x32xf32>
    %348 = vector.broadcast %347 : vector<1x32xf32> to vector<16x32xf32>
    %349 = arith.addf %345, %348 : vector<16x32xf32>
    %c1_134 = arith.constant 1 : index
    %c0_135 = arith.constant 0 : index
    %c0_136 = arith.constant 0 : index
    %350 = vector.load %arg11[%c1_134, %c0_135, %c0_136] : memref<2x1x32xf32, #tpu.memory_space<vmem>>, vector<1x1x32xf32>
    %351 = vector.shape_cast %350 : vector<1x1x32xf32> to vector<1x32xf32>
    %c1_137 = arith.constant 1 : index
    %c0_138 = arith.constant 0 : index
    %c0_139 = arith.constant 0 : index
    %352 = vector.load %arg12[%c1_137, %c0_138, %c0_139] : memref<2x1x32xf32, #tpu.memory_space<vmem>>, vector<1x1x32xf32>
    %353 = vector.shape_cast %352 : vector<1x1x32xf32> to vector<1x32xf32>
    %cst_140 = arith.constant dense<0.000000e+00> : vector<16xf32>
    %354 = vector.multi_reduction <add>, %349, %cst_140 [1] : vector<16x32xf32> to vector<16xf32>
    %355 = vector.shape_cast %354 : vector<16xf32> to vector<16x1xf32>
    %cst_141 = arith.constant 3.200000e+01 : f32
    %356 = vector.broadcast %cst_141 : f32 to vector<16x1xf32>
    %357 = arith.divf %355, %356 : vector<16x1xf32>
    %358 = vector.broadcast %357 : vector<16x1xf32> to vector<16x32xf32>
    %359 = arith.subf %349, %358 : vector<16x32xf32>
    %360 = arith.mulf %359, %359 : vector<16x32xf32>
    %cst_142 = arith.constant dense<0.000000e+00> : vector<16xf32>
    %361 = vector.multi_reduction <add>, %360, %cst_142 [1] : vector<16x32xf32> to vector<16xf32>
    %362 = vector.shape_cast %361 : vector<16xf32> to vector<16x1xf32>
    %cst_143 = arith.constant 3.200000e+01 : f32
    %363 = vector.broadcast %cst_143 : f32 to vector<16x1xf32>
    %364 = arith.divf %362, %363 : vector<16x1xf32>
    %cst_144 = arith.constant 9.99999974E-6 : f32
    %365 = vector.broadcast %cst_144 : f32 to vector<16x1xf32>
    %366 = arith.addf %364, %365 : vector<16x1xf32>
    %367 = math.rsqrt %366 : vector<16x1xf32>
    %368 = vector.broadcast %367 : vector<16x1xf32> to vector<16x32xf32>
    %369 = arith.mulf %359, %368 : vector<16x32xf32>
    %370 = vector.broadcast %351 : vector<1x32xf32> to vector<16x32xf32>
    %371 = arith.mulf %369, %370 : vector<16x32xf32>
    %372 = vector.broadcast %353 : vector<1x32xf32> to vector<16x32xf32>
    %373 = arith.addf %371, %372 : vector<16x32xf32>
    %c1_145 = arith.constant 1 : index
    %c0_146 = arith.constant 0 : index
    %c0_147 = arith.constant 0 : index
    %374 = vector.load %arg13[%c1_145, %c0_146, %c0_147] : memref<2x32x128xbf16, #tpu.memory_space<vmem>>, vector<1x32x128xbf16>
    %375 = vector.shape_cast %374 : vector<1x32x128xbf16> to vector<32x128xbf16>
    %376 = arith.truncf %373 : vector<16x32xf32> to vector<16x32xbf16>
    %cst_148 = arith.constant dense<0.000000e+00> : vector<16x128xf32>
    %377 = tpu.matmul %376, %375, %cst_148 {dimension_numbers = #tpu.dot_dimension_numbers<[1], [0], [0], [1], [0, 0, 1, 1], [], []>} : vector<16x32xbf16>, vector<32x128xbf16>, vector<16x128xf32> -> vector<16x128xf32>
    %c1_149 = arith.constant 1 : index
    %c0_150 = arith.constant 0 : index
    %c0_151 = arith.constant 0 : index
    %378 = vector.load %arg14[%c1_149, %c0_150, %c0_151] : memref<2x1x128xf32, #tpu.memory_space<vmem>>, vector<1x1x128xf32>
    %379 = vector.shape_cast %378 : vector<1x1x128xf32> to vector<1x128xf32>
    %380 = vector.broadcast %379 : vector<1x128xf32> to vector<16x128xf32>
    %381 = arith.addf %377, %380 : vector<16x128xf32>
    %382 = arith.mulf %381, %381 : vector<16x128xf32>
    %383 = arith.mulf %381, %382 : vector<16x128xf32>
    %cst_152 = arith.constant 4.471500e-02 : f32
    %384 = vector.broadcast %cst_152 : f32 to vector<16x128xf32>
    %385 = arith.mulf %384, %383 : vector<16x128xf32>
    %386 = arith.addf %381, %385 : vector<16x128xf32>
    %cst_153 = arith.constant 0.797884583 : f32
    %387 = vector.broadcast %cst_153 : f32 to vector<16x128xf32>
    %388 = arith.mulf %387, %386 : vector<16x128xf32>
    %389 = math.tanh %388 : vector<16x128xf32>
    %cst_154 = arith.constant 1.000000e+00 : f32
    %390 = vector.broadcast %cst_154 : f32 to vector<16x128xf32>
    %391 = arith.addf %390, %389 : vector<16x128xf32>
    %cst_155 = arith.constant 5.000000e-01 : f32
    %392 = vector.broadcast %cst_155 : f32 to vector<16x128xf32>
    %393 = arith.mulf %392, %391 : vector<16x128xf32>
    %394 = arith.mulf %381, %393 : vector<16x128xf32>
    %c1_156 = arith.constant 1 : index
    %c0_157 = arith.constant 0 : index
    %c0_158 = arith.constant 0 : index
    %395 = vector.load %arg15[%c1_156, %c0_157, %c0_158] : memref<2x128x32xbf16, #tpu.memory_space<vmem>>, vector<1x128x32xbf16>
    %396 = vector.shape_cast %395 : vector<1x128x32xbf16> to vector<128x32xbf16>
    %397 = arith.truncf %394 : vector<16x128xf32> to vector<16x128xbf16>
    %cst_159 = arith.constant dense<0.000000e+00> : vector<16x32xf32>
    %398 = tpu.matmul %397, %396, %cst_159 {dimension_numbers = #tpu.dot_dimension_numbers<[1], [0], [0], [1], [0, 0, 1, 1], [], []>} : vector<16x128xbf16>, vector<128x32xbf16>, vector<16x32xf32> -> vector<16x32xf32>
    %399 = arith.addf %349, %398 : vector<16x32xf32>
    %c1_160 = arith.constant 1 : index
    %c0_161 = arith.constant 0 : index
    %c0_162 = arith.constant 0 : index
    %400 = vector.load %arg16[%c1_160, %c0_161, %c0_162] : memref<2x1x32xf32, #tpu.memory_space<vmem>>, vector<1x1x32xf32>
    %401 = vector.shape_cast %400 : vector<1x1x32xf32> to vector<1x32xf32>
    %402 = vector.broadcast %401 : vector<1x32xf32> to vector<16x32xf32>
    %403 = arith.addf %399, %402 : vector<16x32xf32>
    %c0_163 = arith.constant 0 : index
    %c0_164 = arith.constant 0 : index
    %404 = vector.load %arg17[%c0_163, %c0_164] : memref<1x32xf32, #tpu.memory_space<vmem>>, vector<1x32xf32>
    %c0_165 = arith.constant 0 : index
    %c0_166 = arith.constant 0 : index
    %405 = vector.load %arg18[%c0_165, %c0_166] : memref<1x32xf32, #tpu.memory_space<vmem>>, vector<1x32xf32>
    %cst_167 = arith.constant dense<0.000000e+00> : vector<16xf32>
    %406 = vector.multi_reduction <add>, %403, %cst_167 [1] : vector<16x32xf32> to vector<16xf32>
    %407 = vector.shape_cast %406 : vector<16xf32> to vector<16x1xf32>
    %cst_168 = arith.constant 3.200000e+01 : f32
    %408 = vector.broadcast %cst_168 : f32 to vector<16x1xf32>
    %409 = arith.divf %407, %408 : vector<16x1xf32>
    %410 = vector.broadcast %409 : vector<16x1xf32> to vector<16x32xf32>
    %411 = arith.subf %403, %410 : vector<16x32xf32>
    %412 = arith.mulf %411, %411 : vector<16x32xf32>
    %cst_169 = arith.constant dense<0.000000e+00> : vector<16xf32>
    %413 = vector.multi_reduction <add>, %412, %cst_169 [1] : vector<16x32xf32> to vector<16xf32>
    %414 = vector.shape_cast %413 : vector<16xf32> to vector<16x1xf32>
    %cst_170 = arith.constant 3.200000e+01 : f32
    %415 = vector.broadcast %cst_170 : f32 to vector<16x1xf32>
    %416 = arith.divf %414, %415 : vector<16x1xf32>
    %cst_171 = arith.constant 9.99999974E-6 : f32
    %417 = vector.broadcast %cst_171 : f32 to vector<16x1xf32>
    %418 = arith.addf %416, %417 : vector<16x1xf32>
    %419 = math.rsqrt %418 : vector<16x1xf32>
    %420 = vector.broadcast %419 : vector<16x1xf32> to vector<16x32xf32>
    %421 = arith.mulf %411, %420 : vector<16x32xf32>
    %422 = vector.broadcast %404 : vector<1x32xf32> to vector<16x32xf32>
    %423 = arith.mulf %421, %422 : vector<16x32xf32>
    %424 = vector.broadcast %405 : vector<1x32xf32> to vector<16x32xf32>
    %425 = arith.addf %423, %424 : vector<16x32xf32>
    %426 = arith.mulf %425, %425 : vector<16x32xf32>
    %427 = arith.mulf %425, %426 : vector<16x32xf32>
    %cst_172 = arith.constant 4.471500e-02 : f32
    %428 = vector.broadcast %cst_172 : f32 to vector<16x32xf32>
    %429 = arith.mulf %428, %427 : vector<16x32xf32>
    %430 = arith.addf %425, %429 : vector<16x32xf32>
    %cst_173 = arith.constant 0.797884583 : f32
    %431 = vector.broadcast %cst_173 : f32 to vector<16x32xf32>
    %432 = arith.mulf %431, %430 : vector<16x32xf32>
    %433 = math.tanh %432 : vector<16x32xf32>
    %cst_174 = arith.constant 1.000000e+00 : f32
    %434 = vector.broadcast %cst_174 : f32 to vector<16x32xf32>
    %435 = arith.addf %434, %433 : vector<16x32xf32>
    %cst_175 = arith.constant 5.000000e-01 : f32
    %436 = vector.broadcast %cst_175 : f32 to vector<16x32xf32>
    %437 = arith.mulf %436, %435 : vector<16x32xf32>
    %438 = arith.mulf %425, %437 : vector<16x32xf32>
    %439 = vector.shape_cast %438 : vector<16x32xf32> to vector<1x16x32xf32>
    %cst_176 = arith.constant dense<0.000000e+00> : vector<1x32xf32>
    %440 = vector.multi_reduction <add>, %439, %cst_176 [1] : vector<1x16x32xf32> to vector<1x32xf32>
    %cst_177 = arith.constant 1.600000e+01 : f32
    %441 = vector.broadcast %cst_177 : f32 to vector<1x32xf32>
    %442 = arith.divf %440, %441 : vector<1x32xf32>
    %c0_178 = arith.constant 0 : index
    %c0_179 = arith.constant 0 : index
    %443 = vector.load %arg19[%c0_178, %c0_179] : memref<32x128xbf16, #tpu.memory_space<vmem>>, vector<32x128xbf16>
    %444 = arith.truncf %442 : vector<1x32xf32> to vector<1x32xbf16>
    %cst_180 = arith.constant dense<0.000000e+00> : vector<1x128xf32>
    %445 = tpu.matmul %444, %443, %cst_180 {dimension_numbers = #tpu.dot_dimension_numbers<[1], [0], [0], [1], [0, 0, 1, 1], [], []>} : vector<1x32xbf16>, vector<32x128xbf16>, vector<1x128xf32> -> vector<1x128xf32>
    %c0_181 = arith.constant 0 : index
    %c0_182 = arith.constant 0 : index
    %446 = vector.load %arg20[%c0_181, %c0_182] : memref<1x128xf32, #tpu.memory_space<vmem>>, vector<1x128xf32>
    %447 = arith.addf %445, %446 : vector<1x128xf32>
    %c0_183 = arith.constant 0 : index
    %c0_184 = arith.constant 0 : index
    %c0_185 = arith.constant 0 : index
    %448 = vector.load %arg21[%c0_183, %c0_184, %c0_185] : memref<1x1x128xf32, #tpu.memory_space<vmem>>, vector<1x1x128xf32>
    %449 = vector.shape_cast %448 : vector<1x1x128xf32> to vector<1x128xf32>
    %450 = vector.shape_cast %447 : vector<1x128xf32> to vector<1x1x128xf32>
    tpu.vector_store %arg21[%c0_183, %c0_184, %c0_185], %450 {strides = array<i32>} : memref<1x1x128xf32, #tpu.memory_space<vmem>>, vector<1x1x128xf32>,
    return
  }
  func.func @transform_0(%arg0: i32) -> (i32, i32, i32) {
    %c0_i32 = arith.constant 0 : i32
    %c0_i32_0 = arith.constant 0 : i32
    %c0_i32_1 = arith.constant 0 : i32
    return %arg0, %c0_i32, %c0_i32_0 : i32, i32, i32
  }
  func.func @transform_1(%arg0: i32) -> (i32, i32) {
    %c0_i32 = arith.constant 0 : i32
    %c0_i32_0 = arith.constant 0 : i32
    %c0_i32_1 = arith.constant 0 : i32
    return %c0_i32, %c0_i32_0 : i32, i32
  }
  func.func @transform_2(%arg0: i32) -> (i32, i32) {
    %c0_i32 = arith.constant 0 : i32
    %c0_i32_0 = arith.constant 0 : i32
    %c0_i32_1 = arith.constant 0 : i32
    return %c0_i32, %c0_i32_0 : i32, i32
  }
  func.func @transform_3(%arg0: i32) -> (i32, i32) {
    %c0_i32 = arith.constant 0 : i32
    %c0_i32_0 = arith.constant 0 : i32
    %c0_i32_1 = arith.constant 0 : i32
    return %c0_i32, %c0_i32_0 : i32, i32
  }
  func.func @transform_4(%arg0: i32) -> (i32, i32, i32) {
    %c0_i32 = arith.constant 0 : i32
    %c0_i32_0 = arith.constant 0 : i32
    %c0_i32_1 = arith.constant 0 : i32
    %c0_i32_2 = arith.constant 0 : i32
    return %c0_i32, %c0_i32_0, %c0_i32_1 : i32, i32, i32
  }
  func.func @transform_5(%arg0: i32) -> (i32, i32, i32) {
    %c0_i32 = arith.constant 0 : i32
    %c0_i32_0 = arith.constant 0 : i32
    %c0_i32_1 = arith.constant 0 : i32
    %c0_i32_2 = arith.constant 0 : i32
    return %c0_i32, %c0_i32_0, %c0_i32_1 : i32, i32, i32
  }
  func.func @transform_6(%arg0: i32) -> (i32, i32, i32) {
    %c0_i32 = arith.constant 0 : i32
    %c0_i32_0 = arith.constant 0 : i32
    %c0_i32_1 = arith.constant 0 : i32
    %c0_i32_2 = arith.constant 0 : i32
    return %c0_i32, %c0_i32_0, %c0_i32_1 : i32, i32, i32
  }
  func.func @transform_7(%arg0: i32) -> (i32, i32, i32) {
    %c0_i32 = arith.constant 0 : i32
    %c0_i32_0 = arith.constant 0 : i32
    %c0_i32_1 = arith.constant 0 : i32
    %c0_i32_2 = arith.constant 0 : i32
    return %c0_i32, %c0_i32_0, %c0_i32_1 : i32, i32, i32
  }
  func.func @transform_8(%arg0: i32) -> (i32, i32, i32) {
    %c0_i32 = arith.constant 0 : i32
    %c0_i32_0 = arith.constant 0 : i32
    %c0_i32_1 = arith.constant 0 : i32
    %c0_i32_2 = arith.constant 0 : i32
    return %c0_i32, %c0_i32_0, %c0_i32_1 : i32, i32, i32
  }
  func.func @transform_9(%arg0: i32) -> (i32, i32, i32) {
    %c0_i32 = arith.constant 0 : i32
    %c0_i32_0 = arith.constant 0 : i32
    %c0_i32_1 = arith.constant 0 : i32
    %c0_i32_2 = arith.constant 0 : i32
    return %c0_i32, %c0_i32_0, %c0_i32_1 : i32, i32, i32
  }
  func.func @transform_10(%arg0: i32) -> (i32, i32, i32) {
    %c0_i32 = arith.constant 0 : i32
    %c0_i32_0 = arith.constant 0 : i32
    %c0_i32_1 = arith.constant 0 : i32
    %c0_i32_2 = arith.constant 0 : i32
    return %c0_i32, %c0_i32_0, %c0_i32_1 : i32, i32, i32
  }
  func.func @transform_11(%arg0: i32) -> (i32, i32, i32) {
    %c0_i32 = arith.constant 0 : i32
    %c0_i32_0 = arith.constant 0 : i32
    %c0_i32_1 = arith.constant 0 : i32
    %c0_i32_2 = arith.constant 0 : i32
    return %c0_i32, %c0_i32_0, %c0_i32_1 : i32, i32, i32
  }
  func.func @transform_12(%arg0: i32) -> (i32, i32, i32) {
    %c0_i32 = arith.constant 0 : i32
    %c0_i32_0 = arith.constant 0 : i32
    %c0_i32_1 = arith.constant 0 : i32
    %c0_i32_2 = arith.constant 0 : i32
    return %c0_i32, %c0_i32_0, %c0_i32_1 : i32, i32, i32
  }
  func.func @transform_13(%arg0: i32) -> (i32, i32, i32) {
    %c0_i32 = arith.constant 0 : i32
    %c0_i32_0 = arith.constant 0 : i32
    %c0_i32_1 = arith.constant 0 : i32
    %c0_i32_2 = arith.constant 0 : i32
    return %c0_i32, %c0_i32_0, %c0_i32_1 : i32, i32, i32
  }
  func.func @transform_14(%arg0: i32) -> (i32, i32, i32) {
    %c0_i32 = arith.constant 0 : i32
    %c0_i32_0 = arith.constant 0 : i32
    %c0_i32_1 = arith.constant 0 : i32
    %c0_i32_2 = arith.constant 0 : i32
    return %c0_i32, %c0_i32_0, %c0_i32_1 : i32, i32, i32
  }
  func.func @transform_15(%arg0: i32) -> (i32, i32, i32) {
    %c0_i32 = arith.constant 0 : i32
    %c0_i32_0 = arith.constant 0 : i32
    %c0_i32_1 = arith.constant 0 : i32
    %c0_i32_2 = arith.constant 0 : i32
    return %c0_i32, %c0_i32_0, %c0_i32_1 : i32, i32, i32
  }
  func.func @transform_16(%arg0: i32) -> (i32, i32) {
    %c0_i32 = arith.constant 0 : i32
    %c0_i32_0 = arith.constant 0 : i32
    %c0_i32_1 = arith.constant 0 : i32
    return %c0_i32, %c0_i32_0 : i32, i32
  }
  func.func @transform_17(%arg0: i32) -> (i32, i32) {
    %c0_i32 = arith.constant 0 : i32
    %c0_i32_0 = arith.constant 0 : i32
    %c0_i32_1 = arith.constant 0 : i32
    return %c0_i32, %c0_i32_0 : i32, i32
  }
  func.func @transform_18(%arg0: i32) -> (i32, i32) {
    %c0_i32 = arith.constant 0 : i32
    %c0_i32_0 = arith.constant 0 : i32
    %c0_i32_1 = arith.constant 0 : i32
    return %c0_i32, %c0_i32_0 : i32, i32
  }
  func.func @transform_19(%arg0: i32) -> (i32, i32) {
    %c0_i32 = arith.constant 0 : i32
    %c0_i32_0 = arith.constant 0 : i32
    %c0_i32_1 = arith.constant 0 : i32
    return %c0_i32, %c0_i32_0 : i32, i32
  }
  func.func @transform_20(%arg0: i32) -> (i32, i32, i32) {
    %c0_i32 = arith.constant 0 : i32
    %c0_i32_0 = arith.constant 0 : i32
    %c0_i32_1 = arith.constant 0 : i32
    return %arg0, %c0_i32, %c0_i32_0 : i32, i32, i32
  }
}

</mosaic_0001>

<bundles_post_ra>
// kernel: vision_transformer_forward.1
= control target key start
LH: loop header
LB: loop body
LE: loop exit
PB: predicated region body
PF: predicated region fallthrough
CT: control target
= control target key end

     0   :  { %s3313_s0 = inlined_call_operand.vmem [shape: f32[2,16,64], index: 0, kind: input, shape index: {}]   ;;  %s3314_s1 = inlined_call_operand.vmem [shape: f32[16,32], index: 1, kind: input, shape index: {}]   ;;  %s3315_s2 = inlined_call_operand.vmem [shape: bf16[64,32], index: 2, kind: input, shape index: {}]   ;;  %s3316_s3 = inlined_call_operand.vmem [shape: f32[1,32], index: 3, kind: input, shape index: {}]   ;;  %s3317_s4 = inlined_call_operand.vmem [shape: f32[2,1,32], index: 4, kind: input, shape index: {}]   ;;  %s3318_s5 = inlined_call_operand.vmem [shape: f32[2,1,32], index: 5, kind: input, shape index: {}]   ;;  %s3319_s6 = inlined_call_operand.vmem [shape: bf16[2,32,96], index: 6, kind: input, shape index: {}]   ;;  %s3320_s7 = inlined_call_operand.vmem [shape: f32[2,1,96], index: 7, kind: input, shape index: {}]   ;;  %s3321_s8 = inlined_call_operand.vmem [shape: bf16[2,32,32], index: 8, kind: input, shape index: {}]   ;;  %s3322_s9 = inlined_call_operand.vmem [shape: f32[2,1,32], index: 9, kind: input, shape index: {}]   ;;  %s3323_s10 = inlined_call_operand.vmem [shape: f32[2,1,32], index: 10, kind: input, shape index: {}]   ;;  %s3324_s11 = inlined_call_operand.vmem [shape: f32[2,1,32], index: 11, kind: input, shape index: {}]   ;;  %s3325_s12 = inlined_call_operand.vmem [shape: bf16[2,32,128], index: 12, kind: input, shape index: {}]   ;;  %s3326_s13 = inlined_call_operand.vmem [shape: f32[2,1,128], index: 13, kind: input, shape index: {}]   ;;  %s3327_s14 = inlined_call_operand.vmem [shape: bf16[2,128,32], index: 14, kind: input, shape index: {}]   ;;  %s3328_s15 = inlined_call_operand.vmem [shape: f32[2,1,32], index: 15, kind: input, shape index: {}]   ;;  %s3329_s16 = inlined_call_operand.vmem [shape: f32[1,32], index: 16, kind: input, shape index: {}]   ;;  %s3330_s17 = inlined_call_operand.vmem [shape: f32[1,32], index: 17, kind: input, shape index: {}]   ;;  %s3331_s18 = inlined_call_operand.vmem [shape: bf16[32,128], index: 18, kind: input, shape index: {}]   ;;  %s3332_s19 = inlined_call_operand.vmem [shape: f32[1,128], index: 19, kind: input, shape index: {}]   ;;  %s3333_s20 = inlined_call_operand.hbm [shape: f32[2,1,128], index: 20, kind: output, shape index: {}]  }
   0x1   :  { %3355 = sst [smem:[#allocation11_spill]] %s3313_s0 }
   0x2   :  { %3356 = sst [smem:[#allocation12_spill]] %s3314_s1 }
   0x3   :  { %3357 = sst [smem:[#allocation13_spill]] %s3315_s2 }
   0x4   :  { %3358 = sst [smem:[#allocation14_spill]] %s3316_s3 }
   0x5   :  { %3359 = sst [smem:[#allocation15_spill]] %s3317_s4 }
   0x6   :  { %3360 = sst [smem:[#allocation16_spill]] %s3318_s5 }
   0x7   :  { %3361 = sst [smem:[#allocation17_spill]] %s3319_s6 }
   0x8   :  { %3362 = sst [smem:[#allocation18_spill]] %s3332_s19 }
   0x9   :  { %25 = vsyncpa [#allocation3], 0 }
   0xa   :  { %27 = vsyncpa [#allocation3 + $0x1], 0  ;;  %s2822_s1 = smov 0   ;;  %s2824_s22 = smov 0  }
   0xb   :  { %s2826_s23 = smov 0   ;;  %s2828_s24 = smov 0  }
   0xc LB: > { %3363 = sst [smem:[#allocation5_spill]] %s2690_s1  ;;  %s2843_s2 = sadd.s32 4294967295, %s2702_s24   ;;  %s2702_s24 = sphi %s2828_s24, %s3395_s24   ;;  %s2698_s23 = sphi %s2826_s23, %s3397_s23   ;;  %s2694_s22 = sphi %s2824_s22, %s3399_s22   ;;  %s2690_s1 = sphi %s2822_s1, %s3398_s1  }
   0xd   : > { %3364 = sst [smem:[#allocation6_spill]] %s2698_s23  ;;  %s2244_s25 = sadd.s32 4294967294, %s2702_s24  }
   0xe   : > { %3365 = sst [smem:[#allocation7_spill]] %s2702_s24  ;;  %s2847_s3 = sadd.s32 1, %s2702_s24  }
   0xf   : > { %3366 = sst [smem:[#allocation8_spill]] %s2847_s3  ;;  %s465_s26 = sadd.s32 1, %s2698_s23 }
  0x10   : > { %s462_s27 = ssub.s32 %s2702_s24, %s2847_s3  ;;  %p475_p0 = scmp.ne.s32.totalorder %s2698_s23, %s2694_s22 }
  0x11   : > { %p463_p1 = scmp.eq.s32.totalorder %s462_s27, 0  ;;  %p476_p2 = scmp.eq.s32.totalorder %s2843_s2, 1 }
  0x12   : > { %p481_p3 = scmp.ne.s32.totalorder %s2694_s22, %s2690_s1  ;;  %p482_p4 = scmp.eq.s32.totalorder %s2244_s25, 1 }
  0x13   : > { %s2858_s28 = scalar_select %p463_p1, %s2698_s23, %s465_s26  }
  0x14   : > { %p2860_p5 = por %p476_p2, %p475_p0  ;;  %p2864_p6 = por %p482_p4, %p481_p3 }
  0x15   : > { %3367 = sst [smem:[#allocation9_spill]] %s2858_s28  ;;  %p2247_p7 = scmp.ge.s32.totalorder %s2702_s24, 1 }
  0x16   : > { %s3369_s29 = scalar_select %p2864_p6, 1, 0 }
  0x17   : > { %p565_p8 = scmp.lt.s32.totalorder %s2702_s24, 3 }
  0x18   : > { %3370 = sst [smem:[#allocation10_spill]] %s3369_s29 }
  0x19   : > { %p566_p9 = pnand %p2247_p7, %p565_p8 }
  0x1a   : > { %s3371_s21 = sld [smem:[#allocation13_spill]] (!%p566_p9)  ;;  %p622_p10 = scmp.lt.s32.totalorder (!%p566_p9), %s2843_s2, 1 }
  0x1b   : > { %569 = sbr.rel (%p566_p9) target bundleno = 5182 (0x143e), region = 100  ;;  %s3372_s24 = sld [smem:[#allocation11_spill]] (!%p566_p9) }
  0x1c   : > { %s3374_s1 = sld [smem:[#allocation12_spill]] (!%p566_p9)  ;;  %s3353_s0 = smov (!%p566_p9), 96  }
  0x1d   : > { %s3376_s6 = sld [smem:[#allocation17_spill]] (!%p566_p9)  ;;  %s3351_s25 = smov (!%p566_p9), 80  }
  0x1e   : > { %s3377_s23 = sld [smem:[#allocation15_spill]] (!%p566_p9)  ;;  %s3352_s26 = smov (!%p566_p9), 120  }
  0x1f   : > { %s3379_s5 = sld [smem:[#allocation16_spill]] (!%p566_p9)  ;;  %s3344_s19 = smov (!%p566_p9), 104  }
  0x20   : > { %v2442_v0 = vld [vmem:[%s3371_s21 + $0x18] sm:$0xff]  ;;  %v2441_v1 = vld [vmem:[%s3371_s21 + $0x10] sm:$0xff]  ;;  %s623_s27 = scalar_select %p622_p10, %s2843_s2, 1  ;;  %v2440_v2 = vld [vmem:[%s3371_s21 + $0x8] sm:$0xff]  ;;  %vm667_vm0 = vcmask 523264   ;;  %vm691_vm1 = vcmask 261120  }
  0x21   : > { %675 = vmatpush.bf16.msra.mxu0 %v2442_v0  ;;  %v2439_v3 = vld [vmem:[%s3371_s21] sm:$0xff]  ;;  %v2704_v18 = vmov 32.0   ;;  %vm799_vm9 = vcmask 64512   ;;  %vm822_vm10 = vcmask 130048   ;;  %vm940_vm11 = vcmask 1043456  }
  0x22   : > { %s2438_s28 = sshll.u32 %s623_s27, 4  ;;  %s3373_s27 = sld [smem:[#allocation14_spill]]  ;;  %v685_v9 = vld [vmem:[%s3374_s1] sm:$0xff]  ;;  %2540 = vrcp.f32 %v2704_v18 }
  0x23   : > { %s626_s30 = scalar_lea.vmem %s3372_s24, %s2438_s28  ;;  %s3375_s29 = smov %s3374_s1  ;;  %v2444_v35 = vld [vmem:[%s3376_s6 + $0x8] sm:$0xff]  ;;  %v2443_v37 = vld [vmem:[%s3376_s6] sm:$0xff] }
  0x24   : > { %v628_v4 = vld [vmem:[%s626_s30] sm:$0xff]  ;;  %v629_v5 = vld [vmem:[%s626_s30 + $0x8] sm:$0xff]  ;;  %783 = vmatpush.bf16.msra.mxu1 %v2444_v35  ;;  %s3378_s3 = smov %s3377_s23  ;;  %s3349_s30 = smov 64  }
  0x25   : > { %676 = vmatpush.bf16.msra.mxu0 %v2441_v1  ;;  %v638_v6 = vpack.c.bf16 %v629_v5, %v628_v4  ;;  %v686_v14 = vld [vmem:[%s3375_s29 + $0x8] sm:$0xff]  ;;  %v2522_v56 = vld [vmem:[%s3377_s23] ss:$0 sm:$0xff]  ;;  %s3350_s23 = smov 72   ;;  %s3348_s1 = smov 112  }
  0x26   : > { %v2523_v61 = vld [vmem:[%s3379_s5] ss:$0 sm:$0xff]  ;;  %s3343_s24 = smov 56   ;;  %s3346_s28 = smov 40  }
  0x28   : > { %v2521_v7 = vld [vmem:[%s3373_s27] ss:$0 sm:$0xff]  ;;  %v2541_v19 = vpop.eup %2540  ;;  %784 = vmatpush.bf16.msra.mxu1 %v2443_v37  ;;  %s3345_s27 = smov 88  }
  0x29   : > { %677 = vmatpush.bf16.msra.mxu0 %v2440_v2  ;;  %v699_v20 = vmul.f32 32.0, %v2541_v19  ;;  %vm703_vm2 = vweird.f32 %v2541_v19 }
  0x2b   : > { %v700_v21 = vsub.f32 1.0, %v699_v20 }
  0x2d   : > { %678 = vmatpush.bf16.msra.mxu0 %v2439_v3  ;;  %v701_v22 = vmul.f32 %v2541_v19, %v700_v21  ;;  %v2524_v3 = vld [vmem:[%s3320_s7] ss:$0 sm:$0xff] }
  0x2f   : > { %v702_v23 = vadd.f32 %v2541_v19, %v701_v22 }
  0x30   : > { %2266 = vmatmul.msk.bf16.vlgmr.msra.gmra.mxu0 %vm667_vm0, %v638_v6 }
  0x31   : > { %v2904_v24 = vsel %vm703_vm2, %v2541_v19, %v702_v23 }
  0xad   : > { %v680_v8 = vpop.f32.mrf.mxu0 }
  0xae   : > { %v681_v10 = vadd.f32 %v2521_v7, %v680_v8 }
  0xb0   : > { %v2893_v11 = vadd.f32 %v685_v9, %v681_v10 }
  0xb2   : > { %v692_v12 = vsel %vm691_vm1, %v2893_v11, 0.0 }
  0xb3   : > { %693 = vadd.xlane.f32.xlu0 %v692_v12 }
  0xb5   : > { %v682_v13 = vpop.f32.mrf.mxu0 }
  0xb6   : > { %v683_v15 = vadd.f32 %v2521_v7, %v682_v13 }
  0xb8   : > { %v2900_v16 = vadd.f32 %v686_v14, %v683_v15 }
  0xba   : > { %v695_v17 = vsel %vm691_vm1, %v2900_v16, 0.0 }
  0xbb   : > { %696 = vadd.xlane.f32.xlu0 %v695_v17 }
 0x126   : > { %v694_v25 = vpop.xlane.xlu0 %693 }
 0x127   : > { %v705_v26 = vmul.f32 %v2904_v24, %v694_v25 }
 0x129   : > { %v707_v27 = vsub.f32 %v2893_v11, %v705_v26 }
 0x12b   : > { %v709_v28 = vmul.f32 %v707_v27, %v707_v27 }
 0x12d   : > { %v711_v29 = vsel %vm691_vm1, %v709_v28, 0.0 }
 0x12e   : > { %712 = vadd.xlane.f32.xlu1 %v711_v29  ;;  %v697_v30 = vpop.xlane.xlu0 %696 }
 0x12f   : > { %v706_v31 = vmul.f32 %v2904_v24, %v697_v30 }
 0x131   : > { %v708_v32 = vsub.f32 %v2900_v16, %v706_v31 }
 0x133   : > { %v710_v33 = vmul.f32 %v708_v32, %v708_v32 }
 0x135   : > { %v714_v34 = vsel %vm691_vm1, %v710_v33, 0.0 }
 0x136   : > { %715 = vadd.xlane.f32.xlu1 %v714_v34 }
 0x1a1   : > { %v713_v36 = vpop.xlane.xlu1 %712 }
 0x1a2   : > { %v717_v38 = vmul.f32 %v713_v36, %v2904_v24 }
 0x1a4   : > { %v719_v39 = vadd.f32 1e-05, %v717_v38 }
 0x1a6   : > { %2542 = vrsqrt.f32 %v719_v39  ;;  %vm727_vm4 = vweird.f32 %v719_v39 }
 0x1a9   : > { %v716_v40 = vpop.xlane.xlu1 %715 }
 0x1aa   : > { %v718_v41 = vmul.f32 %v716_v40, %v2904_v24 }
 0x1ac   : > { %v2543_v42 = vpop.eup %2542  ;;  %v720_v43 = vadd.f32 1e-05, %v718_v41 }
 0x1ad   : > { %v722_v44 = vmul.f32 %v2543_v42, %v719_v39  ;;  %vm728_vm3 = vweird.f32 %v2543_v42 }
 0x1ae   : > { %2544 = vrsqrt.f32 %v720_v43  ;;  %vm729_vm5 = vmor %vm727_vm4, %vm728_vm3  ;;  %vm737_vm7 = vweird.f32 %v720_v43 }
 0x1af   : > { %v723_v45 = vmul.f32 %v2543_v42, %v722_v44 }
 0x1b1   : > { %v724_v46 = vmul.f32 0.5, %v723_v45 }
 0x1b3   : > { %v725_v47 = vsub.f32 1.5, %v724_v46 }
 0x1b4   : > { %v2545_v48 = vpop.eup %2544 }
 0x1b5   : > { %v726_v49 = vmul.f32 %v2543_v42, %v725_v47  ;;  %v732_v50 = vmul.f32 %v2545_v48, %v720_v43  ;;  %vm738_vm6 = vweird.f32 %v2545_v48 }
 0x1b6   : > { %vm739_vm8 = vmor %vm737_vm7, %vm738_vm6 }
 0x1b7   : > { %v733_v51 = vmul.f32 %v2545_v48, %v732_v50  ;;  %v730_v52 = vsel %vm729_vm5, %v2543_v42, %v726_v49 }
 0x1b8   : > { %v741_v55 = vmul.f32 %v730_v52, %v707_v27 }
 0x1b9   : > { %v734_v53 = vmul.f32 0.5, %v733_v51 }
 0x1ba   : > { %v746_v60 = vmul.f32 %v2522_v56, %v741_v55 }
 0x1bb   : > { %v735_v54 = vsub.f32 1.5, %v734_v53 }
 0x1bc   : > { %v751_v63 = vadd.f32 %v2523_v61, %v746_v60 }
 0x1bd   : > { %v736_v57 = vmul.f32 %v2545_v48, %v735_v54 }
 0x1bf   : > { %v740_v58 = vsel %vm739_vm8, %v2545_v48, %v736_v57 }
 0x1c0   : > { %v742_v59 = vmul.f32 %v740_v58, %v708_v32 }
 0x1c2   : > { %v747_v62 = vmul.f32 %v2522_v56, %v742_v59 }
 0x1c4   : > { %v752_v0 = vadd.f32 %v2523_v61, %v747_v62 }
 0x1c6   : > { %v757_v1 = vpack.c.bf16 %v752_v0, %v751_v63 }
 0x1c8   : > { %2275 = vmatmul.msk.bf16.vlgmr.msra.gmra.mxu1 %vm691_vm1, %v757_v1 }
 0x245   : > { %v786_v2 = vpop.f32.mrf.mxu1 }
 0x246   : > { %v787_v5 = vadd.f32 %v2524_v3, %v786_v2 }
 0x24d   : > { %v788_v4 = vpop.f32.mrf.mxu1 }
 0x24e   : > { %v789_v6 = vadd.f32 %v2524_v3, %v788_v4 }
 0x250   : > { %v2930_v7 = vpack.c.bf16 %v789_v6, %v787_v5 }
 0x252   : > { %846 = vrot.lane.b32.xlu1 %v2930_v7, %s3349_s30  ;;  %797 = vrot.lane.b32.xlu2 %v2930_v7, %s3353_s0  ;;  %s3382_s30 = smov 80   ;;  %s3386_s0 = smov 88  }
 0x2ac   : > { %v798_v8 = vpop.permute.xlu2 %797 }
 0x2ad   : > { %v804_v9 = vsel %vm799_vm9, %v798_v8, 0 }
 0x2ae   : > { %813 = vmatpush.bf16.xpose.msra.mxu2 %v804_v9 }
 0x2b5   : > { %2276 = vmatmul.msk.bf16.vlgmr.msra.gmra.mxu2 %vm799_vm9, %v2930_v7 }
 0x2c4   : > { %v847_v10 = vpop.permute.xlu1 %846 }
 0x2c5   : > { %859 = vmatpush.bf16.msra.mxu3 %v847_v10 }
 0x338   : > { %v815_v12 = vpop.f32.mrf.mxu2 }
 0x339   : > { %v820_v13 = vmul.f32 0.35355338, %v815_v12 }
 0x33b   : > { %v823_v14 = vsel %vm822_vm10, %v820_v13, -inf }
 0x33c   : > { %824 = vmax.xlane.f32.xlu2 %v823_v14 }
 0x340   : > { %v817_v15 = vpop.f32.mrf.mxu2 }
 0x341   : > { %v821_v17 = vmul.f32 0.35355338, %v817_v15 }
 0x343   : > { %v826_v18 = vsel %vm822_vm10, %v821_v17, -inf }
 0x344   : > { %827 = vmax.xlane.f32.xlu0 %v826_v18 }
 0x354   : > { %980 = vrot.lane.b32.xlu2 %v2930_v7, %s3351_s25  ;;  %s3384_s25 = smov 64  }
 0x3af   : > { %v825_v19 = vpop.xlane.xlu2 %824 }
 0x3b0   : > { %v829_v20 = vsub.f32 %v820_v13, %v825_v19 }
 0x3b2   : > { %v831_v21 = vmul.f32 1.442695, %v829_v20 }
 0x3b4   : > { %2546 = vpow2.f32 %v831_v21 }
 0x3b7   : > { %v828_v22 = vpop.xlane.xlu0 %827  ;;  %v981_v38 = vpop.permute.xlu2 %980 }
 0x3b8   : > { %v830_v23 = vsub.f32 %v821_v17, %v828_v22  ;;  %v986_v41 = vsel %vm799_vm9, %v981_v38, 0 }
 0x3ba   : > { %v2547_v25 = vpop.eup %2546  ;;  %v833_v26 = vmul.f32 1.442695, %v830_v23 }
 0x3bb   : > { %v835_v27 = vsel %vm822_vm10, %v2547_v25, 0.0 }
 0x3bc   : > { %2548 = vpow2.f32 %v833_v26  ;;  %836 = vadd.xlane.f32.xlu1 %v835_v27 }
 0x3c2   : > { %v2549_v28 = vpop.eup %2548 }
 0x3c3   : > { %v838_v29 = vsel %vm822_vm10, %v2549_v28, 0.0 }
 0x3c4   : > { %839 = vadd.xlane.f32.xlu0 %v838_v29 }
 0x3d5   : > { %867 = vrot.lane.b32.xlu1 %v2930_v7, %s3352_s26  ;;  %s3387_s26 = smov 104  }
 0x3d8   : > { %869 = vrot.lane.b32.xlu0 %v2930_v7, %s3345_s27  ;;  %s3380_s27 = smov 96  }
 0x3dd   : > { %1072 = vrot.lane.b32.xlu1 %v2930_v7, %s3350_s23  ;;  %s3385_s23 = smov 112  }
 0x3e0   : > { %978 = vrot.lane.b32.xlu0 %v2930_v7, %s3348_s1  ;;  %s3383_s1 = smov 72  }
 0x3e8   : > { %1070 = vrot.lane.b32.xlu0 %v2930_v7, %s3344_s19  ;;  %s3381_s19 = smov 120  }
 0x42f   : > { %v837_v30 = vpop.xlane.xlu1 %836 }
 0x430   : > { %2550 = vrcp.f32 %v837_v30 }
 0x436   : > { %v2551_v32 = vpop.eup %2550 }
 0x437   : > { %v840_v31 = vpop.xlane.xlu0 %839  ;;  %v843_v34 = vmul.f32 %v2551_v32, %v2547_v25 }
 0x438   : > { %2552 = vrcp.f32 %v840_v31 }
 0x43e   : > { %v2553_v33 = vpop.eup %2552 }
 0x43f   : > { %v844_v35 = vmul.f32 %v2553_v33, %v2549_v28 }
 0x441   : > { %v845_v36 = vpack.c.bf16 %v844_v35, %v843_v34 }
 0x443   : > { %2277 = vmatmul.msk.bf16.vlgmr.msra.gmra.mxu3 %vm822_vm10, %v845_v36 }
 0x447   : > { %v868_v37 = vpop.permute.xlu1 %867 }
 0x44a   : > { %v870_v39 = vpop.permute.xlu0 %869 }
 0x44b   : > { %v875_v40 = vsel %vm799_vm9, %v870_v39, 0  ;;  %v791_v39 = vld [vmem:[%s3321_s8] sm:$0xf] }
 0x44c   : > { %884 = vmatpush.bf16.xpose.msrb.mxu3 %v875_v40  ;;  %v962_v40 = vsel %vm940_vm11, %v791_v39, 0 }
 0x44f   : > { %v1073_v42 = vpop.permute.xlu1 %1072 }
 0x450   : > { %v1078_v43 = vsel %vm799_vm9, %v1073_v42, 0 }
 0x451   : > { %1087 = vmatpush.bf16.xpose.msrb.mxu0 %v1078_v43 }
 0x452   : > { %v979_v44 = vpop.permute.xlu0 %978 }
 0x453   : > { %2278 = vmatmul.msk.bf16.vlgmr.msrb.gmra.mxu3 %vm799_vm9, %v868_v37 }
 0x454   : > { %995 = vmatpush.bf16.xpose.msra.mxu3 %v986_v41 }
 0x45a   : > { %v1071_v45 = vpop.permute.xlu0 %1070 }
 0x45b   : > { %2285 = vmatmul.msk.bf16.vlgmr.msrb.gmra.mxu0 %vm799_vm9, %v1071_v45 }
 0x463   : > { %2282 = vmatmul.msk.bf16.vlgmr.msra.gmra.mxu3 %vm799_vm9, %v979_v44 }
 0x4c6   : > { %v2962_v46 = vpop.f32.mrf.mxu3 }
 0x4ce   : > { %v2964_v47 = vpop.f32.mrf.mxu3 }
 0x4cf   : > { %v866_v48 = vpack.c.bf16 %v2964_v47, %v2962_v46  ;;  %v794_v46 = vld [vmem:[%s3321_s8 + $0xc] sm:$0xf] }
 0x4d0   : > { %v1144_v47 = vsel %vm940_vm11, %v794_v46, 0 }
 0x4d6   : > { %v886_v49 = vpop.f32.mrf.mxu3 }
 0x4d7   : > { %v891_v50 = vmul.f32 0.35355338, %v886_v49 }
 0x4d8   : > { %v1089_v51 = vpop.f32.mrf.mxu0 }
 0x4d9   : > { %v893_v52 = vsel %vm822_vm10, %v891_v50, -inf  ;;  %v1094_v59 = vmul.f32 0.35355338, %v1089_v51 }
 0x4da   : > { %894 = vmax.xlane.f32.xlu1 %v893_v52 }
 0x4db   : > { %v1096_v62 = vsel %vm822_vm10, %v1094_v59, -inf }
 0x4de   : > { %v888_v53 = vpop.f32.mrf.mxu3 }
 0x4df   : > { %v892_v54 = vmul.f32 0.35355338, %v888_v53 }
 0x4e0   : > { %v1091_v55 = vpop.f32.mrf.mxu0 }
 0x4e1   : > { %v1095_v56 = vmul.f32 0.35355338, %v1091_v55  ;;  %v896_v57 = vsel %vm822_vm10, %v892_v54, -inf }
 0x4e2   : > { %897 = vmax.xlane.f32.xlu0 %v896_v57 }
 0x4e3   : > { %v1099_v58 = vsel %vm822_vm10, %v1095_v56, -inf }
 0x4e4   : > { %1100 = vmax.xlane.f32.xlu2 %v1099_v58 }
 0x4e6   : > { %v997_v60 = vpop.f32.mrf.mxu3 }
 0x4e7   : > { %v1002_v61 = vmul.f32 0.35355338, %v997_v60 }
 0x4e9   : > { %v1004_v63 = vsel %vm822_vm10, %v1002_v61, -inf }
 0x4ea   : > { %1097 = vmax.xlane.f32.xlu0 %v1096_v62 }
 0x4ec   : > { %1005 = vmax.xlane.f32.xlu2 %v1004_v63 }
 0x4ee   : > { %v999_v0 = vpop.f32.mrf.mxu3 }
 0x4ef   : > { %v1003_v1 = vmul.f32 0.35355338, %v999_v0 }
 0x4f1   : > { %v1007_v2 = vsel %vm822_vm10, %v1003_v1, -inf }
 0x4f2   : > { %1008 = vmax.xlane.f32.xlu1 %v1007_v2 }
 0x504   : > { %916 = vrot.lane.b32.xlu2 %v2930_v7, %s3343_s24  ;;  %s3347_s24 = smov 48  }
 0x54d   : > { %v895_v9 = vpop.xlane.xlu1 %894 }
 0x54e   : > { %v899_v15 = vsub.f32 %v891_v50, %v895_v9 }
 0x550   : > { %v901_v20 = vmul.f32 1.442695, %v899_v15 }
 0x555   : > { %v898_v3 = vpop.xlane.xlu0 %897 }
 0x556   : > { %v900_v6 = vsub.f32 %v892_v54, %v898_v3  ;;  %v793_v3 = vld [vmem:[%s3321_s8 + $0x8] sm:$0xf] }
 0x557   : > { %v1101_v4 = vpop.xlane.xlu2 %1100 }
 0x558   : > { %v1103_v5 = vsub.f32 %v1095_v56, %v1101_v4  ;;  %v903_v10 = vmul.f32 1.442695, %v900_v6  ;;  %v1052_v4 = vsel %vm940_vm11, %v793_v3, 0 }
 0x55a   : > { %v1106_v8 = vmul.f32 1.442695, %v1103_v5 }
 0x55c   : > { %2554 = vpow2.f32 %v1106_v8 }
 0x55d   : > { %v1098_v12 = vpop.xlane.xlu0 %1097  ;;  %2556 = vpow2.f32 %v903_v10 }
 0x55e   : > { %v1102_v13 = vsub.f32 %v1094_v59, %v1098_v12 }
 0x55f   : > { %v1006_v14 = vpop.xlane.xlu2 %1005 }
 0x560   : > { %v1104_v17 = vmul.f32 1.442695, %v1102_v13  ;;  %v1010_v27 = vsub.f32 %v1002_v61, %v1006_v14 }
 0x562   : > { %v2555_v18 = vpop.eup %2554  ;;  %2558 = vpow2.f32 %v1104_v17  ;;  %v1012_v31 = vmul.f32 1.442695, %v1010_v27 }
 0x563   : > { %v1111_v19 = vsel %vm822_vm10, %v2555_v18, 0.0  ;;  %v2557_v23 = vpop.eup %2556  ;;  %2560 = vpow2.f32 %v901_v20 }
 0x564   : > { %1112 = vadd.xlane.f32.xlu0 %v1111_v19  ;;  %v908_v30 = vsel %vm822_vm10, %v2557_v23, 0.0 }
 0x565   : > { %v1009_v21 = vpop.xlane.xlu1 %1008 }
 0x566   : > { %v1011_v22 = vsub.f32 %v1003_v1, %v1009_v21  ;;  %v792_v1 = vld [vmem:[%s3321_s8 + $0x4] sm:$0xf] }
 0x567   : > { %v917_v25 = vpop.permute.xlu2 %916  ;;  %v942_v2 = vsel %vm940_vm11, %v792_v1, 0 }
 0x568   : > { %v2559_v26 = vpop.eup %2558  ;;  %v1014_v28 = vmul.f32 1.442695, %v1011_v22  ;;  %929 = vmatpush.bf16.msrb.mxu1 %v917_v25  ;;  %951 = vmatpush.bf16.msrb.mxu2 %v942_v2 }
 0x569   : > { %v1108_v29 = vsel %vm822_vm10, %v2559_v26, 0.0  ;;  %v2561_v32 = vpop.eup %2560 }
 0x56a   : > { %2562 = vpow2.f32 %v1014_v28  ;;  %1109 = vadd.xlane.f32.xlu1 %v1108_v29  ;;  %v905_v34 = vsel %vm822_vm10, %v2561_v32, 0.0 }
 0x56b   : > { %2564 = vpow2.f32 %v1012_v31 }
 0x56c   : > { %909 = vadd.xlane.f32.xlu0 %v908_v30  ;;  %971 = vmatpush.bf16.msra.mxu1 %v962_v40 }
 0x56d   : > { %1061 = vmatpush.bf16.msra.mxu2 %v1052_v4 }
 0x570   : > { %v2563_v33 = vpop.eup %2562 }
 0x571   : > { %v1019_v35 = vsel %vm822_vm10, %v2563_v33, 0.0  ;;  %v2565_v36 = vpop.eup %2564 }
 0x572   : > { %906 = vadd.xlane.f32.xlu1 %v905_v34  ;;  %v1016_v37 = vsel %vm822_vm10, %v2565_v36, 0.0 }
 0x574   : > { %1020 = vadd.xlane.f32.xlu0 %v1019_v35 }
 0x57a   : > { %1017 = vadd.xlane.f32.xlu1 %v1016_v37 }
 0x588   : > { %1119 = vrot.lane.b32.xlu0 %v2930_v7, %s3346_s28 }
 0x593   : > { %1027 = vrot.lane.b32.xlu1 %v2930_v7, %s3347_s24 }
 0x5d7   : > { %v1113_v38 = vpop.xlane.xlu0 %1112 }
 0x5dd   : > { %v1110_v41 = vpop.xlane.xlu1 %1109 }
 0x5df   : > { %v910_v42 = vpop.xlane.xlu0 %909 }
 0x5e0   : > { %2566 = vrcp.f32 %v910_v42 }
 0x5e5   : > { %v907_v43 = vpop.xlane.xlu1 %906 }
 0x5e6   : > { %2568 = vrcp.f32 %v907_v43  ;;  %v2567_v44 = vpop.eup %2566 }
 0x5e7   : > { %v914_v49 = vmul.f32 %v2567_v44, %v2557_v23  ;;  %2570 = vrcp.f32 %v1110_v41  ;;  %v1021_v51 = vpop.xlane.xlu0 %1020 }
 0x5e8   : > { %2572 = vrcp.f32 %v1113_v38 }
 0x5ec   : > { %v2569_v45 = vpop.eup %2568 }
 0x5ed   : > { %v913_v50 = vmul.f32 %v2569_v45, %v2561_v32  ;;  %v2571_v52 = vpop.eup %2570  ;;  %v1018_v58 = vpop.xlane.xlu1 %1017 }
 0x5ee   : > { %v2573_v53 = vpop.eup %2572  ;;  %v1116_v54 = vmul.f32 %v2571_v52, %v2559_v26  ;;  %2574 = vrcp.f32 %v1018_v58  ;;  %v2525_v26 = vld [vmem:[%s3322_s9] ss:$0 sm:$0xff] }
 0x5ef   : > { %v915_v7 = vpack.c.bf16 %v914_v49, %v913_v50  ;;  %v1117_v55 = vmul.f32 %v2573_v53, %v2555_v18  ;;  %2576 = vrcp.f32 %v1021_v51  ;;  %v2446_v49 = vld [vmem:[%s3325_s12 + $0x8] sm:$0xff]  ;;  %v2445_v51 = vld [vmem:[%s3325_s12] sm:$0xff] }
 0x5f1   : > { %2279 = vmatmul.msk.bf16.vlgmr.msrb.gmra.mxu1 %vm822_vm10, %v915_v7  ;;  %v1118_v57 = vpack.c.bf16 %v1117_v55, %v1116_v54 }
 0x5f4   : > { %v2575_v60 = vpop.eup %2574 }
 0x5f5   : > { %v2577_v61 = vpop.eup %2576  ;;  %v1024_v62 = vmul.f32 %v2575_v60, %v2565_v36 }
 0x5f6   : > { %v1025_v63 = vmul.f32 %v2577_v61, %v2563_v33 }
 0x5f8   : > { %v1026_v0 = vpack.c.bf16 %v1025_v63, %v1024_v62 }
 0x5fa   : > { %v1120_v56 = vpop.permute.xlu0 %1119 }
 0x5fb   : > { %1132 = vmatpush.bf16.msrb.mxu3 %v1120_v56 }
 0x5fe   : > { %2286 = vmatmul.msk.bf16.vlgmr.msrb.gmra.mxu3 %vm822_vm10, %v1118_v57 }
 0x601   : > { %2281 = vmatmul.msk.bf16.vlgmr.msra.gmra.mxu1 %vm799_vm9, %v866_v48 }
 0x605   : > { %v1028_v59 = vpop.permute.xlu1 %1027 }
 0x606   : > { %1040 = vmatpush.bf16.msrb.mxu1 %v1028_v59 }
 0x60a   : > { %1153 = vmatpush.bf16.msra.mxu1 %v1144_v47  ;;  %v2526_v47 = vld [vmem:[%s3323_s10] ss:$0 sm:$0xff] }
 0x611   : > { %2283 = vmatmul.msk.bf16.vlgmr.msrb.gmra.mxu1 %vm822_vm10, %v1026_v0 }
 0x66e   : > { %v931_v48 = vpop.f32.mrf.mxu1 }
 0x676   : > { %v933_v5 = vpop.f32.mrf.mxu1 }
 0x677   : > { %v936_v6 = vpack.c.bf16 %v933_v5, %v931_v48  ;;  %v2527_v5 = vld [vmem:[%s3324_s11] ss:$0 sm:$0xff] }
 0x679   : > { %2280 = vmatmul.msk.bf16.vlgmr.msrb.gmra.mxu2 %vm799_vm9, %v936_v6 }
 0x67a   : > { %1256 = vmatpush.bf16.msrb.mxu2 %v2446_v49 }
 0x67e   : > { %v973_v8 = vpop.f32.mrf.mxu1  ;;  %1257 = vmatpush.bf16.msrb.mxu2 %v2445_v51 }
 0x681   : > { %v1134_v9 = vpop.f32.mrf.mxu3 }
 0x686   : > { %v975_v10 = vpop.f32.mrf.mxu1 }
 0x689   : > { %v1136_v12 = vpop.f32.mrf.mxu3 }
 0x68a   : > { %v1139_v13 = vpack.c.bf16 %v1136_v12, %v1134_v9 }
 0x68c   : > { %2287 = vmatmul.msk.bf16.vlgmr.msra.gmra.mxu1 %vm799_vm9, %v1139_v13 }
 0x68e   : > { %v1042_v14 = vpop.f32.mrf.mxu1 }
 0x696   : > { %v1044_v15 = vpop.f32.mrf.mxu1 }
 0x697   : > { %v1047_v17 = vpack.c.bf16 %v1044_v15, %v1042_v14  ;;  %v2454_v14 = vld [vmem:[%s3327_s14 + $0x38] sm:$0xff]  ;;  %v2453_v15 = vld [vmem:[%s3327_s14 + $0x30] sm:$0xff] }
 0x698   : > { %1347 = vmatpush.bf16.msra.mxu0 %v2454_v14 }
 0x699   : > { %2284 = vmatmul.msk.bf16.vlgmr.msra.gmra.mxu2 %vm799_vm9, %v1047_v17  ;;  %v2452_v17 = vld [vmem:[%s3327_s14 + $0x28] sm:$0xff] }
 0x69c   : > { %1348 = vmatpush.bf16.msra.mxu0 %v2453_v15 }
 0x6a0   : > { %1349 = vmatpush.bf16.msra.mxu0 %v2452_v17 }
 0x6fc   : > { %v953_v18 = vpop.f32.mrf.mxu2 }
 0x6fd   : > { %v974_v20 = vadd.f32 %v973_v8, %v953_v18  ;;  %v2451_v18 = vld [vmem:[%s3327_s14 + $0x20] sm:$0xff] }
 0x6fe   : > { %1350 = vmatpush.bf16.msra.mxu0 %v2451_v18 }
 0x704   : > { %v955_v19 = vpop.f32.mrf.mxu2 }
 0x705   : > { %v976_v28 = vadd.f32 %v975_v10, %v955_v19  ;;  %v2450_v19 = vld [vmem:[%s3327_s14 + $0x18] sm:$0xff] }
 0x706   : > { %1351 = vmatpush.bf16.msra.mxu0 %v2450_v19 }
 0x709   : > { %v1155_v21 = vpop.f32.mrf.mxu1 }
 0x711   : > { %v1157_v33 = vpop.f32.mrf.mxu1 }
 0x71c   : > { %v1063_v22 = vpop.f32.mrf.mxu2 }
 0x71d   : > { %v1068_v23 = vadd.f32 %v1063_v22, %v974_v20  ;;  %v2449_v20 = vld [vmem:[%s3327_s14 + $0x10] sm:$0xff]  ;;  %v2528_v22 = vld [vmem:[%s3326_s13] ss:$0 sm:$0xff] }
 0x71e   : > { %1352 = vmatpush.bf16.msra.mxu0 %v2449_v20 }
 0x71f   : > { %v1160_v25 = vadd.f32 %v1155_v21, %v1068_v23  ;;  %v2448_v21 = vld [vmem:[%s3327_s14 + $0x8] sm:$0xff]  ;;  %v2447_v23 = vld [vmem:[%s3327_s14] sm:$0xff] }
 0x721   : > { %v1162_v27 = vadd.f32 %v1160_v25, %v2893_v11 }
 0x722   : > { %1353 = vmatpush.bf16.msra.mxu0 %v2448_v21 }
 0x723   : > { %v3016_v29 = vadd.f32 %v2525_v26, %v1162_v27 }
 0x724   : > { %v1065_v30 = vpop.f32.mrf.mxu2 }
 0x725   : > { %v1069_v31 = vadd.f32 %v1065_v30, %v976_v28  ;;  %v1172_v32 = vsel %vm691_vm1, %v3016_v29, 0.0 }
 0x726   : > { %1173 = vadd.xlane.f32.xlu2 %v1172_v32  ;;  %1354 = vmatpush.bf16.msra.mxu0 %v2447_v23  ;;  %v2530_v23 = vld [vmem:[%s3378_s3 + $0x1] ss:$0 sm:$0xff] }
 0x727   : > { %v1161_v34 = vadd.f32 %v1157_v33, %v1069_v31 }
 0x729   : > { %v1163_v35 = vadd.f32 %v1161_v34, %v2900_v16 }
 0x72b   : > { %v3021_v36 = vadd.f32 %v2525_v26, %v1163_v35 }
 0x72d   : > { %v1175_v37 = vsel %vm691_vm1, %v3021_v36, 0.0 }
 0x72e   : > { %1176 = vadd.xlane.f32.xlu0 %v1175_v37 }
 0x799   : > { %v1174_v11 = vpop.xlane.xlu2 %1173 }
 0x79a   : > { %v1178_v38 = vmul.f32 %v1174_v11, %v2904_v24 }
 0x79c   : > { %v1180_v39 = vsub.f32 %v3016_v29, %v1178_v38 }
 0x79e   : > { %v1182_v40 = vmul.f32 %v1180_v39, %v1180_v39 }
 0x7a0   : > { %v1184_v41 = vsel %vm691_vm1, %v1182_v40, 0.0 }
 0x7a1   : > { %1185 = vadd.xlane.f32.xlu1 %v1184_v41  ;;  %v1177_v42 = vpop.xlane.xlu0 %1176 }
 0x7a2   : > { %v1179_v43 = vmul.f32 %v1177_v42, %v2904_v24 }
 0x7a4   : > { %v1181_v16 = vsub.f32 %v3021_v36, %v1179_v43 }
 0x7a6   : > { %v1183_v44 = vmul.f32 %v1181_v16, %v1181_v16 }
 0x7a8   : > { %v1187_v45 = vsel %vm691_vm1, %v1183_v44, 0.0 }
 0x7a9   : > { %1188 = vadd.xlane.f32.xlu2 %v1187_v45 }
 0x814   : > { %v1186_v50 = vpop.xlane.xlu1 %1185 }
 0x815   : > { %v1190_v7 = vmul.f32 %v1186_v50, %v2904_v24 }
 0x817   : > { %v1192_v52 = vadd.f32 1e-05, %v1190_v7  ;;  %v2529_v7 = vld [vmem:[%s3328_s15] ss:$0 sm:$0xff] }
 0x819   : > { %2578 = vrsqrt.f32 %v1192_v52  ;;  %vm1200_vm13 = vweird.f32 %v1192_v52 }
 0x81c   : > { %v1189_v53 = vpop.xlane.xlu2 %1188 }
 0x81d   : > { %v1191_v54 = vmul.f32 %v1189_v53, %v2904_v24 }
 0x81f   : > { %v2579_v55 = vpop.eup %2578  ;;  %v1193_v56 = vadd.f32 1e-05, %v1191_v54 }
 0x820   : > { %v1195_v57 = vmul.f32 %v2579_v55, %v1192_v52  ;;  %vm1201_vm12 = vweird.f32 %v2579_v55 }
 0x821   : > { %2580 = vrsqrt.f32 %v1193_v56  ;;  %vm1202_vm14 = vmor %vm1200_vm13, %vm1201_vm12  ;;  %vm1210_vm0 = vweird.f32 %v1193_v56 }
 0x822   : > { %v1196_v58 = vmul.f32 %v2579_v55, %v1195_v57 }
 0x824   : > { %v1197_v59 = vmul.f32 0.5, %v1196_v58 }
 0x826   : > { %v1198_v60 = vsub.f32 1.5, %v1197_v59 }
 0x827   : > { %v2581_v61 = vpop.eup %2580 }
 0x828   : > { %v1199_v62 = vmul.f32 %v2579_v55, %v1198_v60  ;;  %v1205_v63 = vmul.f32 %v2581_v61, %v1193_v56  ;;  %vm1211_vm15 = vweird.f32 %v2581_v61 }
 0x829   : > { %vm1212_vm2 = vmor %vm1210_vm0, %vm1211_vm15 }
 0x82a   : > { %v1206_v0 = vmul.f32 %v2581_v61, %v1205_v63  ;;  %v1203_v1 = vsel %vm1202_vm14, %v2579_v55, %v1199_v62 }
 0x82b   : > { %v1214_v48 = vmul.f32 %v1203_v1, %v1180_v39 }
 0x82c   : > { %v1207_v2 = vmul.f32 0.5, %v1206_v0 }
 0x82d   : > { %v1219_v6 = vmul.f32 %v2526_v47, %v1214_v48 }
 0x82e   : > { %v1208_v46 = vsub.f32 1.5, %v1207_v2 }
 0x82f   : > { %v1224_v10 = vadd.f32 %v2527_v5, %v1219_v6 }
 0x830   : > { %v1209_v3 = vmul.f32 %v2581_v61, %v1208_v46  ;;  %v2456_v46 = vld [vmem:[%s3376_s6 + $0x18] sm:$0xff] }
 0x831   : > { %1459 = vmatpush.bf16.msra.mxu3 %v2456_v46 }
 0x832   : > { %v1213_v4 = vsel %vm1212_vm2, %v2581_v61, %v1209_v3  ;;  %v2455_v3 = vld [vmem:[%s3376_s6 + $0x10] sm:$0xff] }
 0x833   : > { %v1215_v8 = vmul.f32 %v1213_v4, %v1181_v16 }
 0x835   : > { %v1220_v9 = vmul.f32 %v2526_v47, %v1215_v8  ;;  %1460 = vmatpush.bf16.msra.mxu3 %v2455_v3 }
 0x837   : > { %v1225_v12 = vadd.f32 %v2527_v5, %v1220_v9 }
 0x839   : > { %v1230_v13 = vpack.c.bf16 %v1225_v12, %v1224_v10 }
 0x83b   : > { %2296 = vmatmul.msk.bf16.vlgmr.msrb.gmra.mxu2 %vm691_vm1, %v1230_v13 }
 0x8be   : > { %v1259_v25 = vpop.f32.mrf.mxu2 }
 0x8bf   : > { %v1260_v26 = vadd.f32 %v2528_v22, %v1259_v25 }
 0x8c1   : > { %v1264_v27 = vmul.f32 %v1260_v26, %v1260_v26 }
 0x8c3   : > { %v1266_v28 = vmul.f32 %v1264_v27, %v1260_v26 }
 0x8c5   : > { %v1268_v30 = vmul.f32 0.044715, %v1266_v28  ;;  %v2531_v28 = vld [vmem:[%s3379_s5 + $0x1] ss:$0 sm:$0xff] }
 0x8c6   : > { %v1261_v31 = vpop.f32.mrf.mxu2 }
 0x8c7   : > { %v1270_v32 = vadd.f32 %v1268_v30, %v1260_v26  ;;  %v1262_v33 = vadd.f32 %v2528_v22, %v1261_v31 }
 0x8c9   : > { %v1272_v34 = vmul.f32 0.7978846, %v1270_v32  ;;  %v1265_v35 = vmul.f32 %v1262_v33, %v1262_v33 }
 0x8cb   : > { %v1267_v37 = vmul.f32 %v1265_v35, %v1262_v33  ;;  %2582 = vtanh.f32 %v1272_v34 }
 0x8cd   : > { %v1269_v11 = vmul.f32 0.044715, %v1267_v37 }
 0x8cf   : > { %v1271_v38 = vadd.f32 %v1269_v11, %v1262_v33  ;;  %v2532_v11 = vld [vmem:[%s3320_s7 + $0x1] ss:$0 sm:$0xff] }
 0x8d1   : > { %v1273_v39 = vmul.f32 0.7978846, %v1271_v38  ;;  %v2583_v40 = vpop.eup %2582 }
 0x8d2   : > { %v1276_v41 = vadd.f32 1.0, %v2583_v40 }
 0x8d3   : > { %2584 = vtanh.f32 %v1273_v39 }
 0x8d4   : > { %v1278_v43 = vmul.f32 0.5, %v1276_v41 }
 0x8d6   : > { %v1280_v45 = vmul.f32 %v1278_v43, %v1260_v26 }
 0x8d9   : > { %v2585_v42 = vpop.eup %2584 }
 0x8da   : > { %v1277_v16 = vadd.f32 1.0, %v2585_v42  ;;  %v2345_v42 = vld [vmem:[%s3321_s8 + $0x10] sm:$0xf] }
 0x8db   : > { %v1636_v43 = vsel %vm940_vm11, %v2345_v42, 0 }
 0x8dc   : > { %v1279_v44 = vmul.f32 0.5, %v1277_v16  ;;  %1645 = vmatpush.bf16.msrb.mxu0 %v1636_v43 }
 0x8de   : > { %v1281_v49 = vmul.f32 %v1279_v44, %v1262_v33 }
 0x8e0   : > { %v1298_v50 = vpack.c.bf16 %v1281_v49, %v1280_v45 }
 0x8e2   : > { %1355 = vmatmul.bf16.vlgmr.msra.gmra.mxu0 %v1298_v50 }
 0x95f   : > { %v1356_v51 = vpop.f32.mrf.mxu0 }
 0x960   : > { %v1361_v52 = vadd.f32 %v1356_v51, %v3016_v29 }
 0x962   : > { %v3077_v53 = vadd.f32 %v2529_v7, %v1361_v52 }
 0x964   : > { %v1373_v54 = vsel %vm691_vm1, %v3077_v53, 0.0 }
 0x965   : > { %1374 = vadd.xlane.f32.xlu2 %v1373_v54 }
 0x967   : > { %v1358_v55 = vpop.f32.mrf.mxu0 }
 0x968   : > { %v1362_v56 = vadd.f32 %v1358_v55, %v3021_v36 }
 0x96a   : > { %v3082_v57 = vadd.f32 %v2529_v7, %v1362_v56 }
 0x96c   : > { %v1376_v58 = vsel %vm691_vm1, %v3082_v57, 0.0 }
 0x96d   : > { %1377 = vadd.xlane.f32.xlu2 %v1376_v58 }
 0x9d8   : > { %v1375_v59 = vpop.xlane.xlu2 %1374 }
 0x9d9   : > { %v1379_v60 = vmul.f32 %v1375_v59, %v2904_v24 }
 0x9db   : > { %v1381_v29 = vsub.f32 %v3077_v53, %v1379_v60 }
 0x9dd   : > { %v1383_v61 = vmul.f32 %v1381_v29, %v1381_v29 }
 0x9df   : > { %v1385_v62 = vsel %vm691_vm1, %v1383_v61, 0.0 }
 0x9e0   : > { %1386 = vadd.xlane.f32.xlu0 %v1385_v62  ;;  %v1378_v63 = vpop.xlane.xlu2 %1377 }
 0x9e1   : > { %v1380_v0 = vmul.f32 %v1378_v63, %v2904_v24 }
 0x9e3   : > { %v1382_v36 = vsub.f32 %v3082_v57, %v1380_v0 }
 0x9e5   : > { %v1384_v1 = vmul.f32 %v1382_v36, %v1382_v36 }
 0x9e7   : > { %v1388_v2 = vsel %vm691_vm1, %v1384_v1, 0.0 }
 0x9e8   : > { %1389 = vadd.xlane.f32.xlu1 %v1388_v2 }
 0xa53   : > { %v1387_v47 = vpop.xlane.xlu0 %1386 }
 0xa54   : > { %v1391_v48 = vmul.f32 %v1387_v47, %v2904_v24 }
 0xa56   : > { %v1393_v4 = vadd.f32 1e-05, %v1391_v48 }
 0xa58   : > { %2586 = vrsqrt.f32 %v1393_v4  ;;  %vm1401_vm4 = vweird.f32 %v1393_v4 }
 0xa5b   : > { %v1390_v5 = vpop.xlane.xlu1 %1389 }
 0xa5c   : > { %v1392_v6 = vmul.f32 %v1390_v5, %v2904_v24 }
 0xa5e   : > { %v2587_v8 = vpop.eup %2586  ;;  %v1394_v9 = vadd.f32 1e-05, %v1392_v6 }
 0xa5f   : > { %v1396_v10 = vmul.f32 %v2587_v8, %v1393_v4  ;;  %vm1402_vm3 = vweird.f32 %v2587_v8 }
 0xa60   : > { %2588 = vrsqrt.f32 %v1394_v9  ;;  %vm1403_vm5 = vmor %vm1401_vm4, %vm1402_vm3  ;;  %vm1411_vm7 = vweird.f32 %v1394_v9 }
 0xa61   : > { %v1397_v12 = vmul.f32 %v2587_v8, %v1396_v10 }
 0xa63   : > { %v1398_v13 = vmul.f32 0.5, %v1397_v12 }
 0xa65   : > { %v1399_v14 = vsub.f32 1.5, %v1398_v13 }
 0xa66   : > { %v2589_v15 = vpop.eup %2588 }
 0xa67   : > { %v1400_v17 = vmul.f32 %v2587_v8, %v1399_v14  ;;  %v1406_v18 = vmul.f32 %v2589_v15, %v1394_v9  ;;  %vm1412_vm6 = vweird.f32 %v2589_v15 }
 0xa68   : > { %vm1413_vm8 = vmor %vm1411_vm7, %vm1412_vm6 }
 0xa69   : > { %v1407_v19 = vmul.f32 %v2589_v15, %v1406_v18  ;;  %v1404_v20 = vsel %vm1403_vm5, %v2587_v8, %v1400_v17 }
 0xa6a   : > { %v1415_v25 = vmul.f32 %v1404_v20, %v1381_v29 }
 0xa6b   : > { %v1408_v21 = vmul.f32 0.5, %v1407_v19 }
 0xa6c   : > { %v1420_v30 = vmul.f32 %v2530_v23, %v1415_v25 }
 0xa6d   : > { %v1409_v22 = vsub.f32 1.5, %v1408_v21 }
 0xa6e   : > { %v1425_v33 = vadd.f32 %v2531_v28, %v1420_v30 }
 0xa6f   : > { %v1410_v26 = vmul.f32 %v2589_v15, %v1409_v22 }
 0xa71   : > { %v1414_v27 = vsel %vm1413_vm8, %v2589_v15, %v1410_v26 }
 0xa72   : > { %v1416_v31 = vmul.f32 %v1414_v27, %v1382_v36 }
 0xa74   : > { %v1421_v32 = vmul.f32 %v2530_v23, %v1416_v31 }
 0xa76   : > { %v1426_v34 = vadd.f32 %v2531_v28, %v1421_v32 }
 0xa78   : > { %v1432_v35 = vpack.c.bf16 %v1426_v34, %v1425_v33 }
 0xa7a   : > { %2344 = vmatmul.msk.bf16.vlgmr.msra.gmra.mxu3 %vm691_vm1, %v1432_v35 }
 0xafd   : > { %v1462_v37 = vpop.f32.mrf.mxu3 }
 0xafe   : > { %v1463_v39 = vadd.f32 %v2532_v11, %v1462_v37 }
 0xb05   : > { %v1464_v38 = vpop.f32.mrf.mxu3 }
 0xb06   : > { %v1465_v40 = vadd.f32 %v2532_v11, %v1464_v38 }
 0xb08   : > { %v3110_v41 = vpack.c.bf16 %v1465_v40, %v1463_v39 }
 0xb0a   : > { %1474 = vrot.lane.b32.xlu2 %v3110_v41, %s3380_s27  ;;  %s3388_s27 = smov 56  }
 0xb12   : > { %1542 = vrot.lane.b32.xlu2 %v3110_v41, %s3381_s19  ;;  %s3389_s19 = smov 48  }
 0xb1a   : > { %1654 = vrot.lane.b32.xlu2 %v3110_v41, %s3382_s30  ;;  %s3390_s30 = smov 40  }
 0xb22   : > { %1746 = vrot.lane.b32.xlu2 %v3110_v41, %s3383_s1  ;;  %s3391_s1 = sld [smem:[#allocation18_spill]] }
 0xb64   : > { %v1475_v16 = vpop.permute.xlu2 %1474 }
 0xb65   : > { %v1480_v44 = vsel %vm799_vm9, %v1475_v16, 0 }
 0xb66   : > { %1489 = vmatpush.bf16.xpose.msrb.mxu1 %v1480_v44 }
 0xb6c   : > { %v1543_v45 = vpop.permute.xlu2 %1542 }
 0xb6d   : > { %2349 = vmatmul.msk.bf16.vlgmr.msrb.gmra.mxu1 %vm799_vm9, %v3110_v41 }
 0xb74   : > { %v1655_v49 = vpop.permute.xlu2 %1654 }
 0xb75   : > { %v1660_v12 = vsel %vm799_vm9, %v1655_v49, 0 }
 0xb7c   : > { %v1747_v50 = vpop.permute.xlu2 %1746 }
 0xb7d   : > { %v1752_v7 = vsel %vm799_vm9, %v1747_v50, 0 }
 0xb7e   : > { %1761 = vmatpush.bf16.xpose.msra.mxu0 %v1752_v7 }
 0xbea   : > { %v1491_v51 = vpop.f32.mrf.mxu1 }
 0xbeb   : > { %v1496_v52 = vmul.f32 0.35355338, %v1491_v51 }
 0xbed   : > { %v1498_v54 = vsel %vm822_vm10, %v1496_v52, -inf }
 0xbee   : > { %1499 = vmax.xlane.f32.xlu0 %v1498_v54 }
 0xbf2   : > { %v1493_v55 = vpop.f32.mrf.mxu1 }
 0xbf3   : > { %v1497_v56 = vmul.f32 0.35355338, %v1493_v55 }
 0xbf5   : > { %v1501_v58 = vsel %vm822_vm10, %v1497_v56, -inf }
 0xbf6   : > { %1502 = vmax.xlane.f32.xlu1 %v1501_v58 }
 0xc61   : > { %v1500_v59 = vpop.xlane.xlu0 %1499 }
 0xc62   : > { %v1504_v60 = vsub.f32 %v1496_v52, %v1500_v59 }
 0xc64   : > { %v1506_v29 = vmul.f32 1.442695, %v1504_v60 }
 0xc66   : > { %2590 = vpow2.f32 %v1506_v29 }
 0xc69   : > { %v1503_v61 = vpop.xlane.xlu1 %1502 }
 0xc6a   : > { %v1505_v62 = vsub.f32 %v1497_v56, %v1503_v61 }
 0xc6c   : > { %v2591_v63 = vpop.eup %2590  ;;  %v1508_v0 = vmul.f32 1.442695, %v1505_v62 }
 0xc6d   : > { %v1510_v36 = vsel %vm822_vm10, %v2591_v63, 0.0 }
 0xc6e   : > { %2592 = vpow2.f32 %v1508_v0  ;;  %1511 = vadd.xlane.f32.xlu0 %v1510_v36 }
 0xc74   : > { %v2593_v1 = vpop.eup %2592 }
 0xc75   : > { %v1513_v2 = vsel %vm822_vm10, %v2593_v1, 0.0 }
 0xc76   : > { %1514 = vadd.xlane.f32.xlu1 %v1513_v2 }
 0xc82   : > { %1521 = vrot.lane.b32.xlu0 %v3110_v41, %s3384_s25 }
 0xc8a   : > { %1652 = vrot.lane.b32.xlu0 %v3110_v41, %s3385_s23  ;;  %s620_s23 = sand.u32 1, %s2694_s22  }
 0xc8b   : > { %s621_s24 = scalar_lea.vmem [#allocation2], %s620_s23  ;;  %s2177_s3 = scalar_lea.sflag [#allocation3], %s620_s23 }
 0xc8c   : > { %s2187_s28 = sshll.u32 %s621_s24, 4  ;;  %s2188_s28 = int_to_ptr.vmem [resolvable:$true] %s2187_s28 }
 0xc8f   : > { %1544 = vrot.lane.b32.xlu1 %v3110_v41, %s3386_s0 }
 0xc97   : > { %1744 = vrot.lane.b32.xlu1 %v3110_v41, %s3387_s26  ;;  %s2660_s26 = scalar_lea.hbm %s3333_s20, 2 }
 0xce1   : > { %v1512_v46 = vpop.xlane.xlu0 %1511 }
 0xce9   : > { %v1515_v47 = vpop.xlane.xlu1 %1514 }
 0xcea   : > { %2594 = vrcp.f32 %v1515_v47 }
 0xceb   : > { %2596 = vrcp.f32 %v1512_v46 }
 0xcf0   : > { %v2595_v48 = vpop.eup %2594 }
 0xcf1   : > { %v2597_v3 = vpop.eup %2596  ;;  %v1519_v4 = vmul.f32 %v2595_v48, %v2593_v1 }
 0xcf2   : > { %v1518_v5 = vmul.f32 %v2597_v3, %v2591_v63 }
 0xcf4   : > { %v1522_v6 = vpop.permute.xlu0 %1521  ;;  %v1520_v8 = vpack.c.bf16 %v1519_v4, %v1518_v5 }
 0xcf5   : > { %1534 = vmatpush.bf16.msra.mxu2 %v1522_v6 }
 0xcf8   : > { %2350 = vmatmul.msk.bf16.vlgmr.msra.gmra.mxu2 %vm822_vm10, %v1520_v8 }
 0xcfc   : > { %v1653_v13 = vpop.permute.xlu0 %1652 }
 0xd01   : > { %v1545_v9 = vpop.permute.xlu1 %1544 }
 0xd02   : > { %v1550_v10 = vsel %vm799_vm9, %v1545_v9, 0 }
 0xd03   : > { %1559 = vmatpush.bf16.xpose.msrb.mxu3 %v1550_v10 }
 0xd09   : > { %v1745_v21 = vpop.permute.xlu1 %1744 }
 0xd0a   : > { %2351 = vmatmul.msk.bf16.vlgmr.msrb.gmra.mxu3 %vm799_vm9, %v1543_v45 }
 0xd0b   : > { %1669 = vmatpush.bf16.xpose.msra.mxu3 %v1660_v12 }
 0xd1a   : > { %2355 = vmatmul.msk.bf16.vlgmr.msra.gmra.mxu3 %vm799_vm9, %v1653_v13 }
 0xd7b   : > { %v1536_v14 = vpop.f32.mrf.mxu2 }
 0xd83   : > { %v1538_v15 = vpop.f32.mrf.mxu2 }
 0xd84   : > { %v1541_v17 = vpack.c.bf16 %v1538_v15, %v1536_v14 }
 0xd86   : > { %2354 = vmatmul.msk.bf16.vlgmr.msrb.gmra.mxu0 %vm799_vm9, %v1541_v17 }
 0xd8d   : > { %v1561_v18 = vpop.f32.mrf.mxu3 }
 0xd8e   : > { %v1566_v19 = vmul.f32 0.35355338, %v1561_v18 }
 0xd90   : > { %v1568_v20 = vsel %vm822_vm10, %v1566_v19, -inf }
 0xd91   : > { %1569 = vmax.xlane.f32.xlu0 %v1568_v20  ;;  %v2346_v20 = vld [vmem:[%s3321_s8 + $0x14] sm:$0xf] }
 0xd95   : > { %v1563_v22 = vpop.f32.mrf.mxu3 }
 0xd96   : > { %v1567_v23 = vmul.f32 0.35355338, %v1563_v22  ;;  %2358 = vmatmul.msk.bf16.vlgmr.msra.gmra.mxu0 %vm799_vm9, %v1745_v21  ;;  %v1616_v22 = vsel %vm940_vm11, %v2346_v20, 0 }
 0xd97   : > { %1625 = vmatpush.bf16.msrb.mxu2 %v1616_v22 }
 0xd98   : > { %v1571_v25 = vsel %vm822_vm10, %v1567_v23, -inf }
 0xd99   : > { %1572 = vmax.xlane.f32.xlu2 %v1571_v25 }
 0xd9d   : > { %v1671_v26 = vpop.f32.mrf.mxu3 }
 0xd9e   : > { %v1676_v27 = vmul.f32 0.35355338, %v1671_v26 }
 0xda0   : > { %v1678_v28 = vsel %vm822_vm10, %v1676_v27, -inf }
 0xda1   : > { %1679 = vmax.xlane.f32.xlu1 %v1678_v28 }
 0xda5   : > { %v1673_v30 = vpop.f32.mrf.mxu3 }
 0xda6   : > { %v1677_v31 = vmul.f32 0.35355338, %v1673_v30 }
 0xda8   : > { %v1681_v32 = vsel %vm822_vm10, %v1677_v31, -inf }
 0xda9   : > { %1682 = vmax.xlane.f32.xlu0 %v1681_v32 }
 0xe03   : > { %v3151_v33 = vpop.f32.mrf.mxu0 }
 0xe04   : > { %v1570_v34 = vpop.xlane.xlu0 %1569 }
 0xe05   : > { %v1574_v35 = vsub.f32 %v1566_v19, %v1570_v34 }
 0xe07   : > { %v1576_v37 = vmul.f32 1.442695, %v1574_v35 }
 0xe09   : > { %2598 = vpow2.f32 %v1576_v37 }
 0xe0b   : > { %v3153_v11 = vpop.f32.mrf.mxu0 }
 0xe0c   : > { %v1573_v38 = vpop.xlane.xlu2 %1572 }
 0xe0d   : > { %v1575_v39 = vsub.f32 %v1567_v23, %v1573_v38 }
 0xe0f   : > { %v2599_v40 = vpop.eup %2598  ;;  %v1578_v43 = vmul.f32 1.442695, %v1575_v39 }
 0xe10   : > { %v1580_v42 = vsel %vm822_vm10, %v2599_v40, 0.0 }
 0xe11   : > { %1581 = vadd.xlane.f32.xlu0 %v1580_v42  ;;  %2600 = vpow2.f32 %v1578_v43  ;;  %v2347_v42 = vld [vmem:[%s3321_s8 + $0x18] sm:$0xf] }
 0xe12   : > { %v1726_v43 = vsel %vm940_vm11, %v2347_v42, 0  ;;  %v2535_v42 = vld [vmem:[%s3324_s11 + $0x1] ss:$0 sm:$0xff] }
 0xe13   : > { %v1763_v16 = vpop.f32.mrf.mxu0  ;;  %1735 = vmatpush.bf16.msra.mxu2 %v1726_v43 }
 0xe14   : > { %v1768_v44 = vmul.f32 0.35355338, %v1763_v16  ;;  %v1680_v45 = vpop.xlane.xlu1 %1679  ;;  %v2348_v16 = vld [vmem:[%s3321_s8 + $0x1c] sm:$0xf] }
 0xe15   : > { %v1684_v49 = vsub.f32 %v1676_v27, %v1680_v45 }
 0xe16   : > { %v1770_v50 = vsel %vm822_vm10, %v1768_v44, -inf }
 0xe17   : > { %v1686_v7 = vmul.f32 1.442695, %v1684_v49  ;;  %1771 = vmax.xlane.f32.xlu2 %v1770_v50  ;;  %v2601_v51 = vpop.eup %2600 }
 0xe18   : > { %v1583_v59 = vsel %vm822_vm10, %v2601_v51, 0.0 }
 0xe19   : > { %2602 = vpow2.f32 %v1686_v7 }
 0xe1b   : > { %v1765_v52 = vpop.f32.mrf.mxu0 }
 0xe1c   : > { %v1769_v54 = vmul.f32 0.35355338, %v1765_v52  ;;  %v1683_v55 = vpop.xlane.xlu0 %1682 }
 0xe1d   : > { %v1685_v56 = vsub.f32 %v1677_v31, %v1683_v55 }
 0xe1e   : > { %v1773_v58 = vsel %vm822_vm10, %v1769_v54, -inf }
 0xe1f   : > { %v2603_v60 = vpop.eup %2602  ;;  %v1688_v29 = vmul.f32 1.442695, %v1685_v56  ;;  %1774 = vmax.xlane.f32.xlu1 %v1773_v58  ;;  %1584 = vadd.xlane.f32.xlu2 %v1583_v59 }
 0xe20   : > { %v1690_v61 = vsel %vm822_vm10, %v2603_v60, 0.0 }
 0xe21   : > { %2604 = vpow2.f32 %v1688_v29  ;;  %1691 = vadd.xlane.f32.xlu0 %v1690_v61  ;;  %v2533_v61 = vld [vmem:[%s3322_s9 + $0x1] ss:$0 sm:$0xff] }
 0xe27   : > { %v2605_v62 = vpop.eup %2604 }
 0xe28   : > { %v1693_v63 = vsel %vm822_vm10, %v2605_v62, 0.0 }
 0xe29   : > { %1694 = vadd.xlane.f32.xlu2 %v1693_v63 }
 0xe38   : > { %1591 = vrot.lane.b32.xlu1 %v3110_v41, %s3388_s27  ;;  %s2185_s27 = scalar_lea.hbm %s3333_s20, %s2843_s2 }
 0xe39   : > { %s2189_s25 = sshll.u32 %s2185_s27, 4  ;;  %s2190_s25 = int_to_ptr.hbm [resolvable:$true] %s2189_s25 }
 0xe3a   : > { %s2654_s5 = sshra.s32 %s2190_s25, 4  ;;  %s2655_s5 = int_to_ptr.hbm [resolvable:$true] %s2654_s5 }
 0xe3b   : > { %s2656_s6 = scalar_lea.hbm %s2655_s5, 1  ;;  %p2661_p0 = scmp.lt.s32.totalorder %s2655_s5, %s3333_s20 }
 0xe3c   : > { %p2657_p11 = scmp.ne.s32.totalorder %s2655_s5, %s2656_s6  ;;  %p2662_p1 = scmp.lt.s32.totalorder %s2660_s26, %s2656_s6 }
 0xe3e   : > { %p2658_p12 = pnand %p2657_p11, %p2860_p5  ;;  %p2663_p2 = por %p2662_p1, %p2661_p0 }
 0xe40   : > { %p2659_p13 = pneg %p2658_p12 }
 0xe42   : > { %p2664_p3 = pnand %p2663_p2, %p2659_p13 }
 0xe84   : > { %v1582_v6 = vpop.xlane.xlu0 %1581 }
 0xe8a   : > { %v1772_v0 = vpop.xlane.xlu2 %1771 }
 0xe8b   : > { %v1776_v36 = vsub.f32 %v1768_v44, %v1772_v0  ;;  %v1818_v44 = vsel %vm940_vm11, %v2348_v16, 0 }
 0xe8d   : > { %v1778_v1 = vmul.f32 1.442695, %v1776_v36 }
 0xe8f   : > { %2606 = vpow2.f32 %v1778_v1 }
 0xe92   : > { %v1775_v2 = vpop.xlane.xlu1 %1774  ;;  %v1585_v4 = vpop.xlane.xlu2 %1584 }
 0xe93   : > { %v1777_v46 = vsub.f32 %v1769_v54, %v1775_v2 }
 0xe94   : > { %v1692_v17 = vpop.xlane.xlu0 %1691 }
 0xe95   : > { %v2607_v47 = vpop.eup %2606  ;;  %v1780_v48 = vmul.f32 1.442695, %v1777_v46 }
 0xe96   : > { %v1782_v3 = vsel %vm822_vm10, %v2607_v47, 0.0 }
 0xe97   : > { %2608 = vpow2.f32 %v1780_v48  ;;  %1783 = vadd.xlane.f32.xlu0 %v1782_v3 }
 0xe98   : > { %2610 = vrcp.f32 %v1585_v4 }
 0xe99   : > { %2612 = vrcp.f32 %v1582_v6 }
 0xe9c   : > { %v1695_v18 = vpop.xlane.xlu2 %1694 }
 0xe9d   : > { %v2609_v5 = vpop.eup %2608 }
 0xe9e   : > { %v1785_v8 = vsel %vm822_vm10, %v2609_v5, 0.0  ;;  %v2611_v9 = vpop.eup %2610 }
 0xe9f   : > { %1786 = vadd.xlane.f32.xlu2 %v1785_v8  ;;  %v2613_v10 = vpop.eup %2612  ;;  %v1589_v12 = vmul.f32 %v2611_v9, %v2601_v51 }
 0xea0   : > { %v1588_v13 = vmul.f32 %v2613_v10, %v2599_v40 }
 0xea2   : > { %v1590_v15 = vpack.c.bf16 %v1589_v12, %v1588_v13  ;;  %v2458_v13 = vld [vmem:[%s3325_s12 + $0x18] sm:$0xff] }
 0xeaa   : > { %v1592_v14 = vpop.permute.xlu1 %1591 }
 0xeab   : > { %1604 = vmatpush.bf16.msra.mxu1 %v1592_v14  ;;  %1701 = vrot.lane.b32.xlu0 %v3110_v41, %s3389_s19 }
 0xeae   : > { %2352 = vmatmul.msk.bf16.vlgmr.msra.gmra.mxu1 %vm822_vm10, %v1590_v15 }
 0xeb7   : > { %1793 = vrot.lane.b32.xlu2 %v3110_v41, %s3390_s30 }
 0xf0a   : > { %v1784_v19 = vpop.xlane.xlu0 %1783 }
 0xf0b   : > { %2614 = vrcp.f32 %v1784_v19 }
 0xf0c   : > { %2616 = vrcp.f32 %v1695_v18 }
 0xf11   : > { %v2615_v23 = vpop.eup %2614 }
 0xf12   : > { %v1787_v21 = vpop.xlane.xlu2 %1786  ;;  %v2617_v25 = vpop.eup %2616  ;;  %v1790_v41 = vmul.f32 %v2615_v23, %v2607_v47 }
 0xf13   : > { %2618 = vrcp.f32 %v1787_v21  ;;  %v1699_v31 = vmul.f32 %v2617_v25, %v2605_v62 }
 0xf14   : > { %2620 = vrcp.f32 %v1692_v17  ;;  %v2457_v17 = vld [vmem:[%s3325_s12 + $0x10] sm:$0xff] }
 0xf19   : > { %v2619_v26 = vpop.eup %2618 }
 0xf1a   : > { %v2621_v27 = vpop.eup %2620  ;;  %v1791_v28 = vmul.f32 %v2619_v26, %v2609_v5  ;;  %v1794_v30 = vpop.permute.xlu2 %1793 }
 0xf1b   : > { %1806 = vmatpush.bf16.msrb.mxu3 %v1794_v30  ;;  %v1698_v34 = vmul.f32 %v2621_v27, %v2603_v60 }
 0xf1c   : > { %v1792_v32 = vpack.c.bf16 %v1791_v28, %v1790_v41 }
 0xf1d   : > { %v1702_v35 = vpop.permute.xlu0 %1701  ;;  %v1700_v37 = vpack.c.bf16 %v1699_v31, %v1698_v34 }
 0xf1e   : > { %1714 = vmatpush.bf16.msrb.mxu1 %v1702_v35  ;;  %2359 = vmatmul.msk.bf16.vlgmr.msrb.gmra.mxu3 %vm822_vm10, %v1792_v32 }
 0xf21   : > { %2356 = vmatmul.msk.bf16.vlgmr.msrb.gmra.mxu1 %vm822_vm10, %v1700_v37  ;;  %v2534_v37 = vld [vmem:[%s3323_s10 + $0x1] ss:$0 sm:$0xff] }
 0xf22   : > { %1827 = vmatpush.bf16.msra.mxu1 %v1818_v44 }
 0xf2b   : > { %v1606_v38 = vpop.f32.mrf.mxu1 }
 0xf33   : > { %v1608_v39 = vpop.f32.mrf.mxu1 }
 0xf34   : > { %v1611_v40 = vpack.c.bf16 %v1608_v39, %v1606_v38 }
 0xf36   : > { %2353 = vmatmul.msk.bf16.vlgmr.msrb.gmra.mxu2 %vm799_vm9, %v1611_v40 }
 0xf37   : > { %1935 = vmatpush.bf16.msrb.mxu2 %v2458_v13 }
 0xf3b   : > { %1936 = vmatpush.bf16.msrb.mxu2 %v2457_v17 }
 0xf9e   : > { %v1716_v45 = vpop.f32.mrf.mxu1 }
 0xfa1   : > { %v1808_v49 = vpop.f32.mrf.mxu3 }
 0xfa6   : > { %v1718_v50 = vpop.f32.mrf.mxu1 }
 0xfa7   : > { %v1721_v7 = vpack.c.bf16 %v1718_v50, %v1716_v45 }
 0xfa9   : > { %2357 = vmatmul.msk.bf16.vlgmr.msra.gmra.mxu2 %vm799_vm9, %v1721_v7  ;;  %v1810_v51 = vpop.f32.mrf.mxu3  ;;  %v2466_v7 = vld [vmem:[%s3327_s14 + $0x78] sm:$0xff] }
 0xfaa   : > { %v1813_v52 = vpack.c.bf16 %v1810_v51, %v1808_v49  ;;  %2027 = vmatpush.bf16.msrb.mxu0 %v2466_v7  ;;  %v2465_v51 = vld [vmem:[%s3327_s14 + $0x70] sm:$0xff] }
 0xfac   : > { %2360 = vmatmul.msk.bf16.vlgmr.msra.gmra.mxu1 %vm799_vm9, %v1813_v52  ;;  %v2464_v52 = vld [vmem:[%s3327_s14 + $0x68] sm:$0xff] }
 0xfae   : > { %2028 = vmatpush.bf16.msrb.mxu0 %v2465_v51 }
 0xfb2   : > { %2029 = vmatpush.bf16.msrb.mxu0 %v2464_v52  ;;  %v2538_v52 = vld [vmem:[%s3329_s16] ss:$0 sm:$0xff] }
 0xfb9   : > { %v1627_v54 = vpop.f32.mrf.mxu2 }
 0xfba   : > { %v1648_v56 = vadd.f32 %v3151_v33, %v1627_v54  ;;  %v2463_v54 = vld [vmem:[%s3327_s14 + $0x60] sm:$0xff] }
 0xfbb   : > { %2030 = vmatpush.bf16.msrb.mxu0 %v2463_v54 }
 0xfc1   : > { %v1629_v55 = vpop.f32.mrf.mxu2 }
 0xfc2   : > { %v1650_v63 = vadd.f32 %v3153_v11, %v1629_v55  ;;  %v2462_v55 = vld [vmem:[%s3327_s14 + $0x58] sm:$0xff] }
 0xfc3   : > { %2031 = vmatpush.bf16.msrb.mxu0 %v2462_v55 }
0x1029   : > { %v1829_v58 = vpop.f32.mrf.mxu1 }
0x102c   : > { %v1737_v59 = vpop.f32.mrf.mxu2 }
0x102d   : > { %v1742_v60 = vadd.f32 %v1737_v59, %v1648_v56  ;;  %v2461_v56 = vld [vmem:[%s3327_s14 + $0x50] sm:$0xff]  ;;  %v2536_v59 = vld [vmem:[%s3326_s13 + $0x1] ss:$0 sm:$0xff] }
0x102e   : > { %2032 = vmatpush.bf16.msrb.mxu0 %v2461_v56 }
0x102f   : > { %v1834_v29 = vadd.f32 %v1829_v58, %v1742_v60  ;;  %v2460_v58 = vld [vmem:[%s3327_s14 + $0x48] sm:$0xff]  ;;  %v2459_v60 = vld [vmem:[%s3327_s14 + $0x40] sm:$0xff] }
0x1031   : > { %v1836_v62 = vadd.f32 %v1834_v29, %v3077_v53  ;;  %v1831_v33 = vpop.f32.mrf.mxu1 }
0x1032   : > { %2033 = vmatpush.bf16.msrb.mxu0 %v2460_v58 }
0x1033   : > { %v3193_v0 = vadd.f32 %v2533_v61, %v1836_v62 }
0x1034   : > { %v1739_v36 = vpop.f32.mrf.mxu2 }
0x1035   : > { %v1743_v1 = vadd.f32 %v1739_v36, %v1650_v63  ;;  %v1849_v2 = vsel %vm691_vm1, %v3193_v0, 0.0 }
0x1036   : > { %1850 = vadd.xlane.f32.xlu1 %v1849_v2  ;;  %2034 = vmatpush.bf16.msrb.mxu0 %v2459_v60 }
0x1037   : > { %v1835_v46 = vadd.f32 %v1831_v33, %v1743_v1 }
0x1039   : > { %v1837_v47 = vadd.f32 %v1835_v46, %v3082_v57 }
0x103b   : > { %v3198_v48 = vadd.f32 %v2533_v61, %v1837_v47 }
0x103d   : > { %v1852_v3 = vsel %vm691_vm1, %v3198_v48, 0.0 }
0x103e   : > { %1853 = vadd.xlane.f32.xlu0 %v1852_v3 }
0x10a9   : > { %v1851_v53 = vpop.xlane.xlu1 %1850 }
0x10aa   : > { %v1855_v11 = vmul.f32 %v1851_v53, %v2904_v24 }
0x10ac   : > { %v1857_v4 = vsub.f32 %v3193_v0, %v1855_v11 }
0x10ae   : > { %v1859_v5 = vmul.f32 %v1857_v4, %v1857_v4 }
0x10b0   : > { %v1861_v6 = vsel %vm691_vm1, %v1859_v5, 0.0 }
0x10b1   : > { %1862 = vadd.xlane.f32.xlu2 %v1861_v6  ;;  %v1854_v8 = vpop.xlane.xlu0 %1853 }
0x10b2   : > { %v1856_v9 = vmul.f32 %v1854_v8, %v2904_v24 }
0x10b4   : > { %v1858_v57 = vsub.f32 %v3198_v48, %v1856_v9 }
0x10b6   : > { %v1860_v10 = vmul.f32 %v1858_v57, %v1858_v57 }
0x10b8   : > { %v1864_v12 = vsel %vm691_vm1, %v1860_v10, 0.0 }
0x10b9   : > { %1865 = vadd.xlane.f32.xlu1 %v1864_v12 }
0x1124   : > { %v1863_v14 = vpop.xlane.xlu2 %1862 }
0x1125   : > { %v1867_v15 = vmul.f32 %v1863_v14, %v2904_v24 }
0x1127   : > { %v1869_v18 = vadd.f32 1e-05, %v1867_v15  ;;  %v2537_v15 = vld [vmem:[%s3328_s15 + $0x1] ss:$0 sm:$0xff] }
0x1129   : > { %2622 = vrsqrt.f32 %v1869_v18  ;;  %vm1877_vm10 = vweird.f32 %v1869_v18 }
0x112c   : > { %v1866_v19 = vpop.xlane.xlu1 %1865 }
0x112d   : > { %v1868_v20 = vmul.f32 %v1866_v19, %v2904_v24 }
0x112f   : > { %v2623_v21 = vpop.eup %2622  ;;  %v1870_v22 = vadd.f32 1e-05, %v1868_v20 }
0x1130   : > { %v1872_v23 = vmul.f32 %v2623_v21, %v1869_v18  ;;  %vm1878_vm9 = vweird.f32 %v2623_v21 }
0x1131   : > { %2624 = vrsqrt.f32 %v1870_v22  ;;  %vm1879_vm11 = vmor %vm1877_vm10, %vm1878_vm9  ;;  %vm1887_vm13 = vweird.f32 %v1870_v22 }
0x1132   : > { %v1873_v25 = vmul.f32 %v2623_v21, %v1872_v23 }
0x1134   : > { %v1874_v26 = vmul.f32 0.5, %v1873_v25 }
0x1136   : > { %v1875_v27 = vsub.f32 1.5, %v1874_v26 }
0x1137   : > { %v2625_v41 = vpop.eup %2624 }
0x1138   : > { %v1876_v28 = vmul.f32 %v2623_v21, %v1875_v27  ;;  %v1882_v30 = vmul.f32 %v2625_v41, %v1870_v22  ;;  %vm1888_vm12 = vweird.f32 %v2625_v41 }
0x1139   : > { %vm1889_vm14 = vmor %vm1887_vm13, %vm1888_vm12 }
0x113a   : > { %v1883_v31 = vmul.f32 %v2625_v41, %v1882_v30  ;;  %v1880_v32 = vsel %vm1879_vm11, %v2623_v21, %v1876_v28 }
0x113b   : > { %v1891_v38 = vmul.f32 %v1880_v32, %v1857_v4 }
0x113c   : > { %v1884_v34 = vmul.f32 0.5, %v1883_v31 }
0x113d   : > { %v1896_v43 = vmul.f32 %v2534_v37, %v1891_v38 }
0x113e   : > { %v1885_v35 = vsub.f32 1.5, %v1884_v34 }
0x113f   : > { %v1901_v45 = vadd.f32 %v2535_v42, %v1896_v43 }
0x1140   : > { %v1886_v39 = vmul.f32 %v2625_v41, %v1885_v35 }
0x1142   : > { %v1890_v40 = vsel %vm1889_vm14, %v2625_v41, %v1886_v39 }
0x1143   : > { %v1892_v16 = vmul.f32 %v1890_v40, %v1858_v57 }
0x1145   : > { %v1897_v44 = vmul.f32 %v2534_v37, %v1892_v16 }
0x1147   : > { %v1902_v49 = vadd.f32 %v2535_v42, %v1897_v44 }
0x1149   : > { %v1908_v50 = vpack.c.bf16 %v1902_v49, %v1901_v45 }
0x114b   : > { %2377 = vmatmul.msk.bf16.vlgmr.msrb.gmra.mxu2 %vm691_vm1, %v1908_v50 }
0x11ce   : > { %v1938_v29 = vpop.f32.mrf.mxu2 }
0x11cf   : > { %v1939_v61 = vadd.f32 %v2536_v59, %v1938_v29  ;;  %v2468_v29 = vld [vmem:[%s3331_s18 + $0x8] sm:$0xff] }
0x11d0   : > { %2168 = vmatpush.bf16.msra.mxu3 %v2468_v29 }
0x11d1   : > { %v1943_v62 = vmul.f32 %v1939_v61, %v1939_v61 }
0x11d3   : > { %v1945_v63 = vmul.f32 %v1943_v62, %v1939_v61 }
0x11d5   : > { %v1947_v36 = vmul.f32 0.044715, %v1945_v63  ;;  %v2467_v63 = vld [vmem:[%s3331_s18] sm:$0xff] }
0x11d6   : > { %v1940_v1 = vpop.f32.mrf.mxu2  ;;  %2169 = vmatpush.bf16.msra.mxu3 %v2467_v63 }
0x11d7   : > { %v1949_v2 = vadd.f32 %v1947_v36, %v1939_v61  ;;  %v1941_v33 = vadd.f32 %v2536_v59, %v1940_v1 }
0x11d9   : > { %v1951_v46 = vmul.f32 0.7978846, %v1949_v2  ;;  %v1944_v47 = vmul.f32 %v1941_v33, %v1941_v33 }
0x11db   : > { %v1946_v3 = vmul.f32 %v1944_v47, %v1941_v33  ;;  %2626 = vtanh.f32 %v1951_v46 }
0x11dd   : > { %v1948_v53 = vmul.f32 0.044715, %v1946_v3 }
0x11df   : > { %v1950_v11 = vadd.f32 %v1948_v53, %v1941_v33 }
0x11e1   : > { %v1952_v4 = vmul.f32 0.7978846, %v1950_v11  ;;  %v2627_v5 = vpop.eup %2626 }
0x11e2   : > { %v1955_v6 = vadd.f32 1.0, %v2627_v5 }
0x11e3   : > { %2628 = vtanh.f32 %v1952_v4 }
0x11e4   : > { %v1957_v9 = vmul.f32 0.5, %v1955_v6 }
0x11e6   : > { %v1959_v12 = vmul.f32 %v1957_v9, %v1939_v61 }
0x11e9   : > { %v2629_v8 = vpop.eup %2628 }
0x11ea   : > { %v1956_v57 = vadd.f32 1.0, %v2629_v8 }
0x11ec   : > { %v1958_v10 = vmul.f32 0.5, %v1956_v57 }
0x11ee   : > { %v1960_v13 = vmul.f32 %v1958_v10, %v1941_v33  ;;  %v2716_v10 = vmov 16.0  }
0x11f0   : > { %v1978_v14 = vpack.c.bf16 %v1960_v13, %v1959_v12 }
0x11f2   : > { %2035 = vmatmul.bf16.vlgmr.msrb.gmra.mxu0 %v1978_v14 }
0x126f   : > { %v2036_v17 = vpop.f32.mrf.mxu0 }
0x1270   : > { %v2041_v18 = vadd.f32 %v2036_v17, %v3193_v0 }
0x1272   : > { %v2048_v19 = vadd.f32 %v2537_v15, %v2041_v18 }
0x1274   : > { %v2052_v20 = vsel %vm691_vm1, %v2048_v19, 0.0 }
0x1275   : > { %2053 = vadd.xlane.f32.xlu1 %v2052_v20 }
0x1277   : > { %v2038_v21 = vpop.f32.mrf.mxu0 }
0x1278   : > { %v2042_v22 = vadd.f32 %v2038_v21, %v3198_v48 }
0x127a   : > { %v2049_v23 = vadd.f32 %v2537_v15, %v2042_v22 }
0x127c   : > { %v2055_v25 = vsel %vm691_vm1, %v2049_v23, 0.0 }
0x127d   : > { %2056 = vadd.xlane.f32.xlu0 %v2055_v25 }
0x12e8   : > { %v2054_v26 = vpop.xlane.xlu1 %2053 }
0x12e9   : > { %v2058_v27 = vmul.f32 %v2054_v26, %v2904_v24 }
0x12eb   : > { %v2060_v41 = vsub.f32 %v2048_v19, %v2058_v27 }
0x12ed   : > { %v2062_v28 = vmul.f32 %v2060_v41, %v2060_v41 }
0x12ef   : > { %v2064_v30 = vsel %vm691_vm1, %v2062_v28, 0.0 }
0x12f0   : > { %2065 = vadd.xlane.f32.xlu1 %v2064_v30  ;;  %v2057_v0 = vpop.xlane.xlu0 %2056 }
0x12f1   : > { %v2059_v31 = vmul.f32 %v2057_v0, %v2904_v24 }
0x12f3   : > { %v2061_v32 = vsub.f32 %v2049_v23, %v2059_v31 }
0x12f5   : > { %v2063_v34 = vmul.f32 %v2061_v32, %v2061_v32 }
0x12f7   : > { %v2067_v35 = vsel %vm691_vm1, %v2063_v34, 0.0 }
0x12f8   : > { %2068 = vadd.xlane.f32.xlu2 %v2067_v35 }
0x1363   : > { %v2066_v48 = vpop.xlane.xlu1 %2065 }
0x1364   : > { %v2070_v37 = vmul.f32 %v2066_v48, %v2904_v24 }
0x1366   : > { %v2072_v38 = vadd.f32 1e-05, %v2070_v37 }
0x1368   : > { %2630 = vrsqrt.f32 %v2072_v38  ;;  %vm2080_vm0 = vweird.f32 %v2072_v38 }
0x136b   : > { %v2069_v39 = vpop.xlane.xlu2 %2068 }
0x136c   : > { %v2071_v40 = vmul.f32 %v2069_v39, %v2904_v24  ;;  %v2539_v24 = vld [vmem:[%s3330_s17] ss:$0 sm:$0xff] }
0x136e   : > { %v2631_v42 = vpop.eup %2630  ;;  %v2073_v43 = vadd.f32 1e-05, %v2071_v40 }
0x136f   : > { %v2075_v16 = vmul.f32 %v2631_v42, %v2072_v38  ;;  %vm2081_vm15 = vweird.f32 %v2631_v42  ;;  %v2146_v38 = vld [vmem:[%s3391_s1] sm:$0x1] }
0x1370   : > { %2632 = vrsqrt.f32 %v2073_v43  ;;  %vm2082_vm2 = vmor %vm2080_vm0, %vm2081_vm15  ;;  %vm2090_vm4 = vweird.f32 %v2073_v43 }
0x1371   : > { %v2076_v44 = vmul.f32 %v2631_v42, %v2075_v16 }
0x1373   : > { %v2077_v45 = vmul.f32 0.5, %v2076_v44 }
0x1375   : > { %v2078_v49 = vsub.f32 1.5, %v2077_v45 }
0x1376   : > { %v2633_v50 = vpop.eup %2632 }
0x1377   : > { %v2079_v7 = vmul.f32 %v2631_v42, %v2078_v49  ;;  %v2085_v51 = vmul.f32 %v2633_v50, %v2073_v43  ;;  %vm2091_vm3 = vweird.f32 %v2633_v50 }
0x1378   : > { %vm2092_vm5 = vmor %vm2090_vm4, %vm2091_vm3 }
0x1379   : > { %v2083_v54 = vsel %vm2082_vm2, %v2631_v42, %v2079_v7  ;;  %v2086_v55 = vmul.f32 %v2633_v50, %v2085_v51 }
0x137a   : > { %v2094_v56 = vmul.f32 %v2083_v54, %v2060_v41 }
0x137b   : > { %v2087_v58 = vmul.f32 0.5, %v2086_v55 }
0x137c   : > { %v2099_v59 = vmul.f32 %v2538_v52, %v2094_v56 }
0x137d   : > { %v2088_v60 = vsub.f32 1.5, %v2087_v58 }
0x137e   : > { %v2104_v61 = vadd.f32 %v2539_v24, %v2099_v59 }
0x137f   : > { %v2089_v62 = vmul.f32 %v2633_v50, %v2088_v60 }
0x1380   : > { %v2106_v36 = vmul.f32 %v2104_v61, %v2104_v61 }
0x1381   : > { %v2093_v1 = vsel %vm2092_vm5, %v2633_v50, %v2089_v62 }
0x1382   : > { %v2108_v2 = vmul.f32 %v2106_v36, %v2104_v61  ;;  %v2095_v33 = vmul.f32 %v2093_v1, %v2061_v32 }
0x1384   : > { %v2110_v46 = vmul.f32 0.044715, %v2108_v2  ;;  %v2100_v47 = vmul.f32 %v2538_v52, %v2095_v33 }
0x1386   : > { %v2112_v3 = vadd.f32 %v2110_v46, %v2104_v61  ;;  %v2105_v53 = vadd.f32 %v2539_v24, %v2100_v47 }
0x1388   : > { %v2114_v11 = vmul.f32 0.7978846, %v2112_v3  ;;  %v2107_v4 = vmul.f32 %v2105_v53, %v2105_v53 }
0x138a   : > { %2634 = vtanh.f32 %v2114_v11  ;;  %v2109_v5 = vmul.f32 %v2107_v4, %v2105_v53 }
0x138b   : > { %2636 = vrcp.f32 %v2716_v10 }
0x138c   : > { %v2111_v6 = vmul.f32 0.044715, %v2109_v5 }
0x138e   : > { %v2113_v8 = vadd.f32 %v2111_v6, %v2105_v53 }
0x1390   : > { %v2635_v9 = vpop.eup %2634  ;;  %v2115_v57 = vmul.f32 0.7978846, %v2113_v8 }
0x1391   : > { %v2118_v12 = vadd.f32 1.0, %v2635_v9  ;;  %v2637_v13 = vpop.eup %2636 }
0x1392   : > { %2638 = vtanh.f32 %v2115_v57  ;;  %v2134_v20 = vmul.f32 16.0, %v2637_v13  ;;  %vm2138_vm6 = vweird.f32 %v2637_v13 }
0x1393   : > { %v2120_v14 = vmul.f32 0.5, %v2118_v12 }
0x1394   : > { %v2135_v25 = vsub.f32 1.0, %v2134_v20 }
0x1395   : > { %v2122_v18 = vmul.f32 %v2120_v14, %v2104_v61 }
0x1396   : > { %v2136_v41 = vmul.f32 %v2637_v13, %v2135_v25 }
0x1397   : > { %v2124_v22 = vsel %vm691_vm1, %v2122_v18, 0.0 }
0x1398   : > { %v2639_v15 = vpop.eup %2638  ;;  %v2137_v0 = vadd.f32 %v2637_v13, %v2136_v41 }
0x1399   : > { %v2119_v17 = vadd.f32 1.0, %v2639_v15 }
0x139a   : > { %v2139_v34 = vsel %vm2138_vm6, %v2637_v13, %v2137_v0 }
0x139b   : > { %v2121_v19 = vmul.f32 0.5, %v2119_v17 }
0x139d   : > { %v2123_v21 = vmul.f32 %v2121_v19, %v2105_v53 }
0x139f   : > { %v2125_v23 = vsel %vm691_vm1, %v2123_v21, 0.0 }
0x13a0   : > { %v2126_v26 = vadd.f32 %v2125_v23, %v2124_v22 }
0x13a2   : > { %v2127_v27 = vrot.slane %v2126_v26, 4 }
0x13a4   : > { %v2128_v28 = vadd.f32 %v2127_v27, %v2126_v26 }
0x13a6   : > { %v2129_v30 = vrot.slane %v2128_v28, 2 }
0x13a8   : > { %v2130_v31 = vadd.f32 %v2129_v30, %v2128_v28 }
0x13aa   : > { %v2131_v32 = vrot.slane %v2130_v31, 1 }
0x13ac   : > { %v2132_v35 = vadd.f32 %v2131_v32, %v2130_v31 }
0x13ae   : > { %v2140_v48 = vmul.f32 %v2139_v34, %v2132_v35 }
0x13b0   : > { %v2145_v37 = vpack.c.bf16 %v2140_v48, %v2140_v48 }
0x13b2   : > { %2435 = vmatmul.msk.bf16.vlgmr.msra.gmra.mxu3 %vm691_vm1, %v2145_v37 }
0x1435   : > { %v2171_v39 = vpop.f32.mrf.mxu3 }
0x1436   : > { %v2172_v40 = vadd.f32 %v2171_v39, %v2146_v38 }
0x1438   : > { %2175 = vst [vmem:[%s621_s24] sm:$0x1] %v2172_v40 }
0x1439   : > { %2667 = shalt.err (!%p2664_p3)
}
0x143a   : > { %2469 = dma.vmem_to_hbm [thread:$0]  (%p2860_p5), %s2188_s28, 16, %s2190_s25, %s2177_s3  }
0x143d   : > { %v2173_v42 = vpop.f32.mrf.mxu3 }
0x143e PF: > { %s3392_s23 = sld [smem:[#allocation7_spill]] }
0x143f   : > { %s3393_s27 = sld [smem:[#allocation5_spill]] }
0x1444   : > { %p2475_p4 = scmp.ge.s32.totalorder %s3392_s23, 2 }
0x1445   : > { %s2201_s24 = sand.u32 1, %s3393_s27  }
0x1446   : > { %p2472_p7 = pnand %p2475_p4, %p2864_p6  ;;  %s2202_s2 = scalar_lea.sflag [#allocation3], %s2201_s24 }
0x1448   : > { %p2473_p8 = pneg %p2472_p7 }
0x144a   : > { %2685 = dma.done.wait (%p2473_p8), %s2202_s2, 16  }
0x144b   : > { %2687 = vsyncadd (%p2473_p8), %s2202_s2, 4294967280  ;;  %s3395_s24 = sld [smem:[#allocation8_spill]]  ;;  %s3398_s1 = smov %s2694_s22 }
0x144c   : > { %s3396_s5 = sld [smem:[#allocation6_spill]] }
0x144d   : > { %s3397_s23 = sld [smem:[#allocation9_spill]] }
0x1451   : > { %p30_p9 = scmp.ge.s32.totalorder %s3395_s24, 4  }
0x1452   : > { %s3399_s22 = smov %s3396_s5 }
0x1453   :  { %32 = sbr.rel (!%p30_p9) target bundleno = 12 (0xc), region = 147 }
0x1458   :  { %2207 = vsyncpa [#allocation3], 1 }
0x1459   :  { %2209 = vsyncpa [#allocation3 + $0x1], 1 }

</bundles_post_ra>
